<compile_context>
chip_gen: v7x
topology: tpu7x:2x2x1
jax: 0.10.0
libtpu: 0.0.40
codegen_flags: <defaults>
</compile_context>

<pallas_src>
import math

import jax
import jax.numpy as jnp
from jax import lax
from jax.experimental import pallas as pl
from jax.experimental.pallas import tpu as pltpu

BN_EPS = 1e-5


def _round_up(v, m):
    return ((v + m - 1) // m) * m


# ---------------------------------------------------------------------------
# Parameter folding (BatchNorm + paired RNN biases -> stacked per-layer weights)
# ---------------------------------------------------------------------------
def _fold_params(p):
    """Fold eval-mode BatchNorm1d layers and (b_ih + b_hh) into stacked matrices so each
    layer is a single matmul:  h_l <- tanh([tanh(h_{l-1}) | h_l] @ W_l + b_l)."""
    def bn(name):
        scale = p[name + "_gamma"] * lax.rsqrt(p[name + "_var"] + BN_EPS)
        shift = p[name + "_beta"] - p[name + "_mean"] * scale
        return scale, shift

    s1, t1 = bn("bn1")
    s2, t2 = bn("bn2")
    s3, t3 = bn("bn3")
    s4, t4 = bn("bn4")

    f = {
        # rnn1 (input size 1): input projection is hoisted into the wrapper.
        "w1x": p["w1x"],                                  # (1, 32) f32
        "b1": (p["b1i"] + p["b1h"])[None, :],             # (1, 32) f32
        "w1h": p["w1h"].astype(jnp.bfloat16),             # (32, 32)
        # rnn2..rnn4: [BN_{l-1}-scaled W_ih ; W_hh] stacked on the contraction axis.
        "w2": jnp.concatenate([s1[:, None] * p["w2x"], p["w2h"]], 0).astype(jnp.bfloat16),
        "b2": (p["b2i"] + p["b2h"] + t1 @ p["w2x"])[None, :],
        "w3": jnp.concatenate([s2[:, None] * p["w3x"], p["w3h"]], 0).astype(jnp.bfloat16),
        "b3": (p["b3i"] + p["b3h"] + t2 @ p["w3x"])[None, :],
        "w4": jnp.concatenate([s3[:, None] * p["w4x"], p["w4h"]], 0).astype(jnp.bfloat16),
        "b4": (p["b4i"] + p["b4h"] + t3 @ p["w4x"])[None, :],
        # BN4 commutes with the time-average pool -> fold into the classifier head.
        "wlin": s4[:, None] * p["wlin"],                  # (64, 2) f32
        "blin": (p["blin"] + t4 @ p["wlin"])[None, :],    # (1, 2) f32
    }
    return f


def _preprocess(x):
    """Per-sample (x - mean) / std (unbiased), guarded against var==0 / T==1."""
    x = jnp.asarray(x, jnp.float32)
    T = x.shape[1]
    mean = jnp.mean(x, axis=1, keepdims=True)
    var = jnp.sum((x - mean) ** 2, axis=1, keepdims=True) / max(T - 1, 1)
    std = jnp.maximum(jnp.sqrt(var), 1e-6)
    return (x - mean) / std


# ---------------------------------------------------------------------------
# Pallas kernel
# ---------------------------------------------------------------------------
def _make_kernel(t_total, tt, needs_mask, unroll):
    def kernel(u1_ref, w1h_ref, w2_ref, b2_ref, w3_ref, b3_ref, w4_ref, b4_ref,
               wlin_ref, blin_ref, out_ref,
               h1_ref, h2_ref, h3_ref, h4_ref, acc_ref):
        ti = pl.program_id(1)

        @pl.when(ti == 0)
        def _init():
            h1_ref[...] = jnp.zeros_like(h1_ref)
            h2_ref[...] = jnp.zeros_like(h2_ref)
            h3_ref[...] = jnp.zeros_like(h3_ref)
            h4_ref[...] = jnp.zeros_like(h4_ref)
            acc_ref[...] = jnp.zeros_like(acc_ref)

        def bdot(a, w_ref):
            # bf16 MXU matmul, f32 accumulation.  Weights are re-read from VMEM refs
            # inside the loop (cheap vld) to keep vregs free for the unrolled body.
            return jnp.dot(a.astype(jnp.bfloat16), w_ref[...],
                           preferred_element_type=jnp.float32)

        def step(t, carry):
            h1, h2, h3, h4, acc = carry
            # rnn1: hoisted input projection u1 (leading-axis load) + recurrent matmul.
            h1 = jnp.tanh(u1_ref[t] + bdot(h1, w1h_ref))
            # rnn2..rnn4: one fused matmul per layer over [tanh(h_prev) | h_l].
            h2 = jnp.tanh(bdot(jnp.concatenate([jnp.tanh(h1), h2], axis=-1), w2_ref)
                          + b2_ref[...])
            h3 = jnp.tanh(bdot(jnp.concatenate([jnp.tanh(h2), h3], axis=-1), w3_ref)
                          + b3_ref[...])
            h4 = jnp.tanh(bdot(jnp.concatenate([jnp.tanh(h3), h4], axis=-1), w4_ref)
                          + b4_ref[...])
            y4 = jnp.tanh(h4)
            if needs_mask:  # trace-time flag: only emitted when T % tt != 0
                y4 = jnp.where(ti * tt + t < t_total, y4, 0.0)
            return h1, h2, h3, h4, acc + y4

        def unrolled_block(i, carry):
            for j in range(unroll):  # visible unroll -> scheduler interleaves timesteps
                carry = step(i * unroll + j, carry)
            return carry

        carry = (h1_ref[...], h2_ref[...], h3_ref[...], h4_ref[...], acc_ref[...])
        h1, h2, h3, h4, acc = lax.fori_loop(0, tt // unroll, unrolled_block, carry)
        h1_ref[...] = h1
        h2_ref[...] = h2
        h3_ref[...] = h3
        h4_ref[...] = h4
        acc_ref[...] = acc

        @pl.when(ti == pl.num_programs(1) - 1)
        def _finalize():
            # AdaptiveAvgPool1d(1) over time, then Linear(64 -> 2) (BN4 folded in).
            pooled = acc_ref[...] * jnp.float32(1.0 / t_total)
            out_ref[...] = (jnp.dot(pooled, wlin_ref[...],
                                    preferred_element_type=jnp.float32)
                            + blin_ref[...])

    return kernel


def audio_classifier_rnn_forward(x, params, *, batch_tile=128, time_tile=128, unroll=4):
    """x: (B, T) float32 waveform.  Returns (B, 2) float32 logits."""
    x = jnp.asarray(x, jnp.float32)
    B, T = x.shape
    f = _fold_params(params)

    # ---- preprocess + hoisted rnn1 input projection (keeps the kernel a clean streaming
    # ---- recurrence; u1 could be stored bf16 to halve HBM traffic for long audio) ----
    xn = _preprocess(x)
    u1 = xn[:, :, None] * f["w1x"] + f["b1"]          # (B, T, 32)
    u1 = jnp.transpose(u1, (1, 0, 2))                 # (T, B, 32) time-major

    # ---- tiling: batch axis "parallel" (megacore), time axis "arbitrary" (recurrence) ----
    tb = batch_tile if B >= batch_tile else _round_up(B, 8)
    tt = time_tile if T >= time_tile else _round_up(T, 8)
    b_pad = _round_up(B, tb)
    t_pad = _round_up(T, tt)
    u1 = jnp.pad(u1, ((0, t_pad - T), (0, b_pad - B), (0, 0)))
    needs_mask = (t_pad != T)
    nb, nt = b_pad // tb, t_pad // tt
    unroll = max(1, math.gcd(int(unroll), tt))

    kernel = _make_kernel(T, tt, needs_mask, unroll)

    def const(shape):
        return pl.BlockSpec(shape, lambda bi, ti: tuple(0 for _ in shape))

    grid_spec = pltpu.PrefetchScalarGridSpec(
        num_scalar_prefetch=0,
        grid=(nb, nt),
        in_specs=[
            pl.BlockSpec((tt, tb, 32), lambda bi, ti: (ti, bi, 0)),   # u1 (pipelined)
            const(f["w1h"].shape),
            const(f["w2"].shape), const(f["b2"].shape),
            const(f["w3"].shape), const(f["b3"].shape),
            const(f["w4"].shape), const(f["b4"].shape),
            const(f["wlin"].shape), const(f["blin"].shape),
        ],
        out_specs=pl.BlockSpec((tb, 2), lambda bi, ti: (bi, 0)),
        scratch_shapes=[
            pltpu.VMEM((tb, 32), jnp.float32),   # h1
            pltpu.VMEM((tb, 32), jnp.float32),   # h2
            pltpu.VMEM((tb, 32), jnp.float32),   # h3
            pltpu.VMEM((tb, 64), jnp.float32),   # h4
            pltpu.VMEM((tb, 64), jnp.float32),   # time-sum accumulator
        ],
    )

    out = pl.pallas_call(
        kernel,
        out_shape=jax.ShapeDtypeStruct((b_pad, 2), jnp.float32),
        grid_spec=grid_spec,
        compiler_params=pltpu.CompilerParams(
            dimension_semantics=("parallel", "arbitrary"),
            vmem_limit_bytes=32 * 1024 * 1024,   # actual use ~4 MiB: safe on v5e/v6e/v7x
        ),
    )(u1, f["w1h"], f["w2"], f["b2"], f["w3"], f["b3"], f["w4"], f["b4"],
      f["wlin"], f["blin"])
    return out[:B]


# ---------------------------------------------------------------------------
# Plain-JAX reference (same folded weights / bf16 casts) for validation
# ---------------------------------------------------------------------------
def reference_forward(x, params):
    x = jnp.asarray(x, jnp.float32)
    B, T = x.shape
    f = _fold_params(params)
    u1 = jnp.transpose(_preprocess(x)[:, :, None] * f["w1x"] + f["b1"], (1, 0, 2))

    def bdot(a, w):
        return jnp.dot(a.astype(jnp.bfloat16), w, preferred_element_type=jnp.float32)

    def step(carry, u1_t):
        h1, h2, h3, h4, acc = carry
        h1 = jnp.tanh(u1_t + bdot(h1, f["w1h"]))
        h2 = jnp.tanh(bdot(jnp.concatenate([jnp.tanh(h1), h2], -1), f["w2"]) + f["b2"])
        h3 = jnp.tanh(bdot(jnp.concatenate([jnp.tanh(h2), h3], -1), f["w3"]) + f["b3"])
        h4 = jnp.tanh(bdot(jnp.concatenate([jnp.tanh(h3), h4], -1), f["w4"]) + f["b4"])
        return (h1, h2, h3, h4, acc + jnp.tanh(h4)), None

    z = lambda n: jnp.zeros((B, n), jnp.float32)
    (_, _, _, _, acc), _ = lax.scan(step, (z(32), z(32), z(32), z(64), z(64)), u1)
    return jnp.dot(acc / T, f["wlin"], preferred_element_type=jnp.float32) + f["blin"]


# ---------------------------------------------------------------------------
# Deterministic parameter init mirroring the module's layer shapes
# ---------------------------------------------------------------------------
def _kaiming_normal(key, shape, fan_in, a=0.1):
    gain = (2.0 / (1.0 + a * a)) ** 0.5
    return (gain / (fan_in ** 0.5)) * jax.random.normal(key, shape, dtype=jnp.float32)


def init_params(key):
    """RNN/Linear weights stored pre-transposed to (in_features, out_features); BN layers
    carry real gamma/beta and running stats (defaults == freshly-initialized BatchNorm1d)."""
    ks = jax.random.split(key, 18)
    u = lambda k, n, h: jax.random.uniform(k, (n,), jnp.float32, -1.0, 1.0) / (h ** 0.5)
    p = {}
    p["w1x"] = _kaiming_normal(ks[0], (1, 32), fan_in=1)
    p["w1h"] = _kaiming_normal(ks[1], (32, 32), fan_in=32)
    p["b1i"], p["b1h"] = u(ks[2], 32, 32), u(ks[3], 32, 32)
    p["w2x"] = _kaiming_normal(ks[4], (32, 32), fan_in=32)
    p["w2h"] = _kaiming_normal(ks[5], (32, 32), fan_in=32)
    p["b2i"], p["b2h"] = u(ks[6], 32, 32), u(ks[7], 32, 32)
    p["w3x"] = _kaiming_normal(ks[8], (32, 32), fan_in=32)
    p["w3h"] = _kaiming_normal(ks[9], (32, 32), fan_in=32)
    p["b3i"], p["b3h"] = u(ks[10], 32, 32), u(ks[11], 32, 32)
    p["w4x"] = _kaiming_normal(ks[12], (32, 64), fan_in=32)
    p["w4h"] = _kaiming_normal(ks[13], (64, 64), fan_in=64)
    p["b4i"], p["b4h"] = u(ks[14], 64, 64), u(ks[15], 64, 64)
    p["wlin"] = _kaiming_normal(ks[16], (64, 2), fan_in=64)
    p["blin"] = u(ks[17], 2, 64)
    for name, n in (("bn1", 32), ("bn2", 32), ("bn3", 32), ("bn4", 64)):
        p[name + "_gamma"] = jnp.ones((n,), jnp.float32)
        p[name + "_beta"] = jnp.zeros((n,), jnp.float32)
        p[name + "_mean"] = jnp.zeros((n,), jnp.float32)
        p[name + "_var"] = jnp.ones((n,), jnp.float32)
    return p


if __name__ == "__main__":
    key = jax.random.PRNGKey(0)
    k_x, k_p = jax.random.split(key)
    B, T = 2, 256
    x = jax.random.normal(k_x, (B, T), dtype=jnp.float32)
    params = init_params(k_p)

    out = jax.block_until_ready(audio_classifier_rnn_forward(x, params))
    assert out.shape == (B, 2) and out.dtype == jnp.float32
    assert bool(jnp.all(jnp.isfinite(out)))

    ref = jax.block_until_ready(reference_forward(x, params))
    assert bool(jnp.allclose(out, ref, atol=2e-2, rtol=2e-2)), (out, ref)

    print("KERNEL_OK")
</pallas_src>

<mosaic_0001>
module attributes {stable_mosaic.version = 11 : i64} {
  func.func @kernel(%arg0: i32, %arg1: i32, %arg2: memref<128x8x32xf32, #tpu.memory_space<vmem>>, %arg3: memref<32x32xbf16, #tpu.memory_space<vmem>>, %arg4: memref<64x32xbf16, #tpu.memory_space<vmem>>, %arg5: memref<1x32xf32, #tpu.memory_space<vmem>>, %arg6: memref<64x32xbf16, #tpu.memory_space<vmem>>, %arg7: memref<1x32xf32, #tpu.memory_space<vmem>>, %arg8: memref<96x64xbf16, #tpu.memory_space<vmem>>, %arg9: memref<1x64xf32, #tpu.memory_space<vmem>>, %arg10: memref<64x2xf32, #tpu.memory_space<vmem>>, %arg11: memref<1x2xf32, #tpu.memory_space<vmem>>, %arg12: memref<8x2xf32, #tpu.memory_space<vmem>>, %arg13: memref<8x32xf32, #tpu.memory_space<vmem>>, %arg14: memref<8x32xf32, #tpu.memory_space<vmem>>, %arg15: memref<8x32xf32, #tpu.memory_space<vmem>>, %arg16: memref<8x64xf32, #tpu.memory_space<vmem>>, %arg17: memref<8x64xf32, #tpu.memory_space<vmem>>) attributes {dimension_semantics = [#tpu.dimension_semantics<parallel>, #tpu.dimension_semantics<arbitrary>], iteration_bounds = array<i64: 1, 2>, scalar_prefetch = 0 : i64, scratch_operands = 5 : i64, tpu.core_type = #tpu.core_type<tc>, window_params = [{transform_indices = @transform_0, window_bounds = array<i64: 128, 8, 32>}, {pipeline_mode = #tpu.pipeline_mode<synchronous>, transform_indices = @transform_1, window_bounds = array<i64: 32, 32>}, {pipeline_mode = #tpu.pipeline_mode<synchronous>, transform_indices = @transform_2, window_bounds = array<i64: 64, 32>}, {pipeline_mode = #tpu.pipeline_mode<synchronous>, transform_indices = @transform_3, window_bounds = array<i64: 1, 32>}, {pipeline_mode = #tpu.pipeline_mode<synchronous>, transform_indices = @transform_4, window_bounds = array<i64: 64, 32>}, {pipeline_mode = #tpu.pipeline_mode<synchronous>, transform_indices = @transform_5, window_bounds = array<i64: 1, 32>}, {pipeline_mode = #tpu.pipeline_mode<synchronous>, transform_indices = @transform_6, window_bounds = array<i64: 96, 64>}, {pipeline_mode = #tpu.pipeline_mode<synchronous>, transform_indices = @transform_7, window_bounds = array<i64: 1, 64>}, {pipeline_mode = #tpu.pipeline_mode<synchronous>, transform_indices = @transform_8, window_bounds = array<i64: 64, 2>}, {pipeline_mode = #tpu.pipeline_mode<synchronous>, transform_indices = @transform_9, window_bounds = array<i64: 1, 2>}, {transform_indices = @transform_10, window_bounds = array<i64: 8, 2>}]} {
    %c0_i32 = arith.constant 0 : i32
    %0 = arith.cmpi eq, %arg1, %c0_i32 : i32
    %1 = arith.extui %0 : i1 to i32
    %c0_i32_0 = arith.constant 0 : i32
    %2 = arith.cmpi ne, %1, %c0_i32_0 : i32
    scf.if %2 {
      %cst = arith.constant 0.000000e+00 : f32
      %18 = vector.broadcast %cst : f32 to vector<8x32xf32>
      %c0_24 = arith.constant 0 : index
      %c0_25 = arith.constant 0 : index
      %19 = vector.load %arg13[%c0_24, %c0_25] : memref<8x32xf32, #tpu.memory_space<vmem>>, vector<8x32xf32>
      tpu.vector_store %arg13[%c0_24, %c0_25], %18 {strides = array<i32>} : memref<8x32xf32, #tpu.memory_space<vmem>>, vector<8x32xf32>,
      %cst_26 = arith.constant 0.000000e+00 : f32
      %20 = vector.broadcast %cst_26 : f32 to vector<8x32xf32>
      %c0_27 = arith.constant 0 : index
      %c0_28 = arith.constant 0 : index
      %21 = vector.load %arg14[%c0_27, %c0_28] : memref<8x32xf32, #tpu.memory_space<vmem>>, vector<8x32xf32>
      tpu.vector_store %arg14[%c0_27, %c0_28], %20 {strides = array<i32>} : memref<8x32xf32, #tpu.memory_space<vmem>>, vector<8x32xf32>,
      %cst_29 = arith.constant 0.000000e+00 : f32
      %22 = vector.broadcast %cst_29 : f32 to vector<8x32xf32>
      %c0_30 = arith.constant 0 : index
      %c0_31 = arith.constant 0 : index
      %23 = vector.load %arg15[%c0_30, %c0_31] : memref<8x32xf32, #tpu.memory_space<vmem>>, vector<8x32xf32>
      tpu.vector_store %arg15[%c0_30, %c0_31], %22 {strides = array<i32>} : memref<8x32xf32, #tpu.memory_space<vmem>>, vector<8x32xf32>,
      %cst_32 = arith.constant 0.000000e+00 : f32
      %24 = vector.broadcast %cst_32 : f32 to vector<8x64xf32>
      %c0_33 = arith.constant 0 : index
      %c0_34 = arith.constant 0 : index
      %25 = vector.load %arg16[%c0_33, %c0_34] : memref<8x64xf32, #tpu.memory_space<vmem>>, vector<8x64xf32>
      tpu.vector_store %arg16[%c0_33, %c0_34], %24 {strides = array<i32>} : memref<8x64xf32, #tpu.memory_space<vmem>>, vector<8x64xf32>,
      %cst_35 = arith.constant 0.000000e+00 : f32
      %26 = vector.broadcast %cst_35 : f32 to vector<8x64xf32>
      %c0_36 = arith.constant 0 : index
      %c0_37 = arith.constant 0 : index
      %27 = vector.load %arg17[%c0_36, %c0_37] : memref<8x64xf32, #tpu.memory_space<vmem>>, vector<8x64xf32>
      tpu.vector_store %arg17[%c0_36, %c0_37], %26 {strides = array<i32>} : memref<8x64xf32, #tpu.memory_space<vmem>>, vector<8x64xf32>,
    } else {
    }
    %c0 = arith.constant 0 : index
    %c0_1 = arith.constant 0 : index
    %3 = vector.load %arg13[%c0, %c0_1] : memref<8x32xf32, #tpu.memory_space<vmem>>, vector<8x32xf32>
    %c0_2 = arith.constant 0 : index
    %c0_3 = arith.constant 0 : index
    %4 = vector.load %arg14[%c0_2, %c0_3] : memref<8x32xf32, #tpu.memory_space<vmem>>, vector<8x32xf32>
    %c0_4 = arith.constant 0 : index
    %c0_5 = arith.constant 0 : index
    %5 = vector.load %arg15[%c0_4, %c0_5] : memref<8x32xf32, #tpu.memory_space<vmem>>, vector<8x32xf32>
    %c0_6 = arith.constant 0 : index
    %c0_7 = arith.constant 0 : index
    %6 = vector.load %arg16[%c0_6, %c0_7] : memref<8x64xf32, #tpu.memory_space<vmem>>, vector<8x64xf32>
    %c0_8 = arith.constant 0 : index
    %c0_9 = arith.constant 0 : index
    %7 = vector.load %arg17[%c0_8, %c0_9] : memref<8x64xf32, #tpu.memory_space<vmem>>, vector<8x64xf32>
    %c0_i32_10 = arith.constant 0 : i32
    %c32_i32 = arith.constant 32 : i32
    %8 = arith.addi %c0_i32_10, %c32_i32 : i32
    %c1_i32 = arith.constant 1 : i32
    %9:5 = scf.for %arg18 = %c0_i32_10 to %8 step %c1_i32 iter_args(%arg19 = %3, %arg20 = %4, %arg21 = %5, %arg22 = %6, %arg23 = %7) -> (vector<8x32xf32>, vector<8x32xf32>, vector<8x32xf32>, vector<8x64xf32>, vector<8x64xf32>)  : i32 {
      %c4_i32 = arith.constant 4 : i32
      %18 = arith.muli %arg18, %c4_i32 : i32
      %c0_i32_24 = arith.constant 0 : i32
      %19 = arith.addi %18, %c0_i32_24 : i32
      %20 = arith.index_cast %19 : i32 to index
      %c0_25 = arith.constant 0 : index
      %c0_26 = arith.constant 0 : index
      %21 = vector.load %arg2[%20, %c0_25, %c0_26] : memref<128x8x32xf32, #tpu.memory_space<vmem>>, vector<1x8x32xf32>
      %22 = vector.shape_cast %21 : vector<1x8x32xf32> to vector<8x32xf32>
      %23 = arith.truncf %arg19 : vector<8x32xf32> to vector<8x32xbf16>
      %c0_27 = arith.constant 0 : index
      %c0_28 = arith.constant 0 : index
      %24 = vector.load %arg3[%c0_27, %c0_28] : memref<32x32xbf16, #tpu.memory_space<vmem>>, vector<32x32xbf16>
      %cst = arith.constant dense<0.000000e+00> : vector<8x32xf32>
      %25 = tpu.matmul %23, %24, %cst {dimension_numbers = #tpu.dot_dimension_numbers<[1], [0], [0], [1], [0, 0, 1, 1], [], []>} : vector<8x32xbf16>, vector<32x32xbf16>, vector<8x32xf32> -> vector<8x32xf32>
      %26 = arith.addf %22, %25 : vector<8x32xf32>
      %27 = math.tanh %26 : vector<8x32xf32>
      %28 = math.tanh %27 : vector<8x32xf32>
      %29 = tpu.concatenate %28, %arg20 in 1 : vector<8x32xf32>, vector<8x32xf32> -> vector<8x64xf32>
      %30 = arith.truncf %29 : vector<8x64xf32> to vector<8x64xbf16>
      %c0_29 = arith.constant 0 : index
      %c0_30 = arith.constant 0 : index
      %31 = vector.load %arg4[%c0_29, %c0_30] : memref<64x32xbf16, #tpu.memory_space<vmem>>, vector<64x32xbf16>
      %cst_31 = arith.constant dense<0.000000e+00> : vector<8x32xf32>
      %32 = tpu.matmul %30, %31, %cst_31 {dimension_numbers = #tpu.dot_dimension_numbers<[1], [0], [0], [1], [0, 0, 1, 1], [], []>} : vector<8x64xbf16>, vector<64x32xbf16>, vector<8x32xf32> -> vector<8x32xf32>
      %c0_32 = arith.constant 0 : index
      %c0_33 = arith.constant 0 : index
      %33 = vector.load %arg5[%c0_32, %c0_33] : memref<1x32xf32, #tpu.memory_space<vmem>>, vector<1x32xf32>
      %34 = vector.broadcast %33 : vector<1x32xf32> to vector<8x32xf32>
      %35 = arith.addf %32, %34 : vector<8x32xf32>
      %36 = math.tanh %35 : vector<8x32xf32>
      %37 = math.tanh %36 : vector<8x32xf32>
      %38 = tpu.concatenate %37, %arg21 in 1 : vector<8x32xf32>, vector<8x32xf32> -> vector<8x64xf32>
      %39 = arith.truncf %38 : vector<8x64xf32> to vector<8x64xbf16>
      %c0_34 = arith.constant 0 : index
      %c0_35 = arith.constant 0 : index
      %40 = vector.load %arg6[%c0_34, %c0_35] : memref<64x32xbf16, #tpu.memory_space<vmem>>, vector<64x32xbf16>
      %cst_36 = arith.constant dense<0.000000e+00> : vector<8x32xf32>
      %41 = tpu.matmul %39, %40, %cst_36 {dimension_numbers = #tpu.dot_dimension_numbers<[1], [0], [0], [1], [0, 0, 1, 1], [], []>} : vector<8x64xbf16>, vector<64x32xbf16>, vector<8x32xf32> -> vector<8x32xf32>
      %c0_37 = arith.constant 0 : index
      %c0_38 = arith.constant 0 : index
      %42 = vector.load %arg7[%c0_37, %c0_38] : memref<1x32xf32, #tpu.memory_space<vmem>>, vector<1x32xf32>
      %43 = vector.broadcast %42 : vector<1x32xf32> to vector<8x32xf32>
      %44 = arith.addf %41, %43 : vector<8x32xf32>
      %45 = math.tanh %44 : vector<8x32xf32>
      %46 = math.tanh %45 : vector<8x32xf32>
      %47 = tpu.concatenate %46, %arg22 in 1 : vector<8x32xf32>, vector<8x64xf32> -> vector<8x96xf32>
      %48 = arith.truncf %47 : vector<8x96xf32> to vector<8x96xbf16>
      %c0_39 = arith.constant 0 : index
      %c0_40 = arith.constant 0 : index
      %49 = vector.load %arg8[%c0_39, %c0_40] : memref<96x64xbf16, #tpu.memory_space<vmem>>, vector<96x64xbf16>
      %cst_41 = arith.constant dense<0.000000e+00> : vector<8x64xf32>
      %50 = tpu.matmul %48, %49, %cst_41 {dimension_numbers = #tpu.dot_dimension_numbers<[1], [0], [0], [1], [0, 0, 1, 1], [], []>} : vector<8x96xbf16>, vector<96x64xbf16>, vector<8x64xf32> -> vector<8x64xf32>
      %c0_42 = arith.constant 0 : index
      %c0_43 = arith.constant 0 : index
      %51 = vector.load %arg9[%c0_42, %c0_43] : memref<1x64xf32, #tpu.memory_space<vmem>>, vector<1x64xf32>
      %52 = vector.broadcast %51 : vector<1x64xf32> to vector<8x64xf32>
      %53 = arith.addf %50, %52 : vector<8x64xf32>
      %54 = math.tanh %53 : vector<8x64xf32>
      %55 = math.tanh %54 : vector<8x64xf32>
      %56 = arith.addf %arg23, %55 : vector<8x64xf32>
      %c4_i32_44 = arith.constant 4 : i32
      %57 = arith.muli %arg18, %c4_i32_44 : i32
      %c1_i32_45 = arith.constant 1 : i32
      %58 = arith.addi %57, %c1_i32_45 : i32
      %59 = arith.index_cast %58 : i32 to index
      %c0_46 = arith.constant 0 : index
      %c0_47 = arith.constant 0 : index
      %60 = vector.load %arg2[%59, %c0_46, %c0_47] : memref<128x8x32xf32, #tpu.memory_space<vmem>>, vector<1x8x32xf32>
      %61 = vector.shape_cast %60 : vector<1x8x32xf32> to vector<8x32xf32>
      %62 = arith.truncf %27 : vector<8x32xf32> to vector<8x32xbf16>
      %c0_48 = arith.constant 0 : index
      %c0_49 = arith.constant 0 : index
      %63 = vector.load %arg3[%c0_48, %c0_49] : memref<32x32xbf16, #tpu.memory_space<vmem>>, vector<32x32xbf16>
      %cst_50 = arith.constant dense<0.000000e+00> : vector<8x32xf32>
      %64 = tpu.matmul %62, %63, %cst_50 {dimension_numbers = #tpu.dot_dimension_numbers<[1], [0], [0], [1], [0, 0, 1, 1], [], []>} : vector<8x32xbf16>, vector<32x32xbf16>, vector<8x32xf32> -> vector<8x32xf32>
      %65 = arith.addf %61, %64 : vector<8x32xf32>
      %66 = math.tanh %65 : vector<8x32xf32>
      %67 = math.tanh %66 : vector<8x32xf32>
      %68 = tpu.concatenate %67, %36 in 1 : vector<8x32xf32>, vector<8x32xf32> -> vector<8x64xf32>
      %69 = arith.truncf %68 : vector<8x64xf32> to vector<8x64xbf16>
      %c0_51 = arith.constant 0 : index
      %c0_52 = arith.constant 0 : index
      %70 = vector.load %arg4[%c0_51, %c0_52] : memref<64x32xbf16, #tpu.memory_space<vmem>>, vector<64x32xbf16>
      %cst_53 = arith.constant dense<0.000000e+00> : vector<8x32xf32>
      %71 = tpu.matmul %69, %70, %cst_53 {dimension_numbers = #tpu.dot_dimension_numbers<[1], [0], [0], [1], [0, 0, 1, 1], [], []>} : vector<8x64xbf16>, vector<64x32xbf16>, vector<8x32xf32> -> vector<8x32xf32>
      %c0_54 = arith.constant 0 : index
      %c0_55 = arith.constant 0 : index
      %72 = vector.load %arg5[%c0_54, %c0_55] : memref<1x32xf32, #tpu.memory_space<vmem>>, vector<1x32xf32>
      %73 = vector.broadcast %72 : vector<1x32xf32> to vector<8x32xf32>
      %74 = arith.addf %71, %73 : vector<8x32xf32>
      %75 = math.tanh %74 : vector<8x32xf32>
      %76 = math.tanh %75 : vector<8x32xf32>
      %77 = tpu.concatenate %76, %45 in 1 : vector<8x32xf32>, vector<8x32xf32> -> vector<8x64xf32>
      %78 = arith.truncf %77 : vector<8x64xf32> to vector<8x64xbf16>
      %c0_56 = arith.constant 0 : index
      %c0_57 = arith.constant 0 : index
      %79 = vector.load %arg6[%c0_56, %c0_57] : memref<64x32xbf16, #tpu.memory_space<vmem>>, vector<64x32xbf16>
      %cst_58 = arith.constant dense<0.000000e+00> : vector<8x32xf32>
      %80 = tpu.matmul %78, %79, %cst_58 {dimension_numbers = #tpu.dot_dimension_numbers<[1], [0], [0], [1], [0, 0, 1, 1], [], []>} : vector<8x64xbf16>, vector<64x32xbf16>, vector<8x32xf32> -> vector<8x32xf32>
      %c0_59 = arith.constant 0 : index
      %c0_60 = arith.constant 0 : index
      %81 = vector.load %arg7[%c0_59, %c0_60] : memref<1x32xf32, #tpu.memory_space<vmem>>, vector<1x32xf32>
      %82 = vector.broadcast %81 : vector<1x32xf32> to vector<8x32xf32>
      %83 = arith.addf %80, %82 : vector<8x32xf32>
      %84 = math.tanh %83 : vector<8x32xf32>
      %85 = math.tanh %84 : vector<8x32xf32>
      %86 = tpu.concatenate %85, %54 in 1 : vector<8x32xf32>, vector<8x64xf32> -> vector<8x96xf32>
      %87 = arith.truncf %86 : vector<8x96xf32> to vector<8x96xbf16>
      %c0_61 = arith.constant 0 : index
      %c0_62 = arith.constant 0 : index
      %88 = vector.load %arg8[%c0_61, %c0_62] : memref<96x64xbf16, #tpu.memory_space<vmem>>, vector<96x64xbf16>
      %cst_63 = arith.constant dense<0.000000e+00> : vector<8x64xf32>
      %89 = tpu.matmul %87, %88, %cst_63 {dimension_numbers = #tpu.dot_dimension_numbers<[1], [0], [0], [1], [0, 0, 1, 1], [], []>} : vector<8x96xbf16>, vector<96x64xbf16>, vector<8x64xf32> -> vector<8x64xf32>
      %c0_64 = arith.constant 0 : index
      %c0_65 = arith.constant 0 : index
      %90 = vector.load %arg9[%c0_64, %c0_65] : memref<1x64xf32, #tpu.memory_space<vmem>>, vector<1x64xf32>
      %91 = vector.broadcast %90 : vector<1x64xf32> to vector<8x64xf32>
      %92 = arith.addf %89, %91 : vector<8x64xf32>
      %93 = math.tanh %92 : vector<8x64xf32>
      %94 = math.tanh %93 : vector<8x64xf32>
      %95 = arith.addf %56, %94 : vector<8x64xf32>
      %c4_i32_66 = arith.constant 4 : i32
      %96 = arith.muli %arg18, %c4_i32_66 : i32
      %c2_i32 = arith.constant 2 : i32
      %97 = arith.addi %96, %c2_i32 : i32
      %98 = arith.index_cast %97 : i32 to index
      %c0_67 = arith.constant 0 : index
      %c0_68 = arith.constant 0 : index
      %99 = vector.load %arg2[%98, %c0_67, %c0_68] : memref<128x8x32xf32, #tpu.memory_space<vmem>>, vector<1x8x32xf32>
      %100 = vector.shape_cast %99 : vector<1x8x32xf32> to vector<8x32xf32>
      %101 = arith.truncf %66 : vector<8x32xf32> to vector<8x32xbf16>
      %c0_69 = arith.constant 0 : index
      %c0_70 = arith.constant 0 : index
      %102 = vector.load %arg3[%c0_69, %c0_70] : memref<32x32xbf16, #tpu.memory_space<vmem>>, vector<32x32xbf16>
      %cst_71 = arith.constant dense<0.000000e+00> : vector<8x32xf32>
      %103 = tpu.matmul %101, %102, %cst_71 {dimension_numbers = #tpu.dot_dimension_numbers<[1], [0], [0], [1], [0, 0, 1, 1], [], []>} : vector<8x32xbf16>, vector<32x32xbf16>, vector<8x32xf32> -> vector<8x32xf32>
      %104 = arith.addf %100, %103 : vector<8x32xf32>
      %105 = math.tanh %104 : vector<8x32xf32>
      %106 = math.tanh %105 : vector<8x32xf32>
      %107 = tpu.concatenate %106, %75 in 1 : vector<8x32xf32>, vector<8x32xf32> -> vector<8x64xf32>
      %108 = arith.truncf %107 : vector<8x64xf32> to vector<8x64xbf16>
      %c0_72 = arith.constant 0 : index
      %c0_73 = arith.constant 0 : index
      %109 = vector.load %arg4[%c0_72, %c0_73] : memref<64x32xbf16, #tpu.memory_space<vmem>>, vector<64x32xbf16>
      %cst_74 = arith.constant dense<0.000000e+00> : vector<8x32xf32>
      %110 = tpu.matmul %108, %109, %cst_74 {dimension_numbers = #tpu.dot_dimension_numbers<[1], [0], [0], [1], [0, 0, 1, 1], [], []>} : vector<8x64xbf16>, vector<64x32xbf16>, vector<8x32xf32> -> vector<8x32xf32>
      %c0_75 = arith.constant 0 : index
      %c0_76 = arith.constant 0 : index
      %111 = vector.load %arg5[%c0_75, %c0_76] : memref<1x32xf32, #tpu.memory_space<vmem>>, vector<1x32xf32>
      %112 = vector.broadcast %111 : vector<1x32xf32> to vector<8x32xf32>
      %113 = arith.addf %110, %112 : vector<8x32xf32>
      %114 = math.tanh %113 : vector<8x32xf32>
      %115 = math.tanh %114 : vector<8x32xf32>
      %116 = tpu.concatenate %115, %84 in 1 : vector<8x32xf32>, vector<8x32xf32> -> vector<8x64xf32>
      %117 = arith.truncf %116 : vector<8x64xf32> to vector<8x64xbf16>
      %c0_77 = arith.constant 0 : index
      %c0_78 = arith.constant 0 : index
      %118 = vector.load %arg6[%c0_77, %c0_78] : memref<64x32xbf16, #tpu.memory_space<vmem>>, vector<64x32xbf16>
      %cst_79 = arith.constant dense<0.000000e+00> : vector<8x32xf32>
      %119 = tpu.matmul %117, %118, %cst_79 {dimension_numbers = #tpu.dot_dimension_numbers<[1], [0], [0], [1], [0, 0, 1, 1], [], []>} : vector<8x64xbf16>, vector<64x32xbf16>, vector<8x32xf32> -> vector<8x32xf32>
      %c0_80 = arith.constant 0 : index
      %c0_81 = arith.constant 0 : index
      %120 = vector.load %arg7[%c0_80, %c0_81] : memref<1x32xf32, #tpu.memory_space<vmem>>, vector<1x32xf32>
      %121 = vector.broadcast %120 : vector<1x32xf32> to vector<8x32xf32>
      %122 = arith.addf %119, %121 : vector<8x32xf32>
      %123 = math.tanh %122 : vector<8x32xf32>
      %124 = math.tanh %123 : vector<8x32xf32>
      %125 = tpu.concatenate %124, %93 in 1 : vector<8x32xf32>, vector<8x64xf32> -> vector<8x96xf32>
      %126 = arith.truncf %125 : vector<8x96xf32> to vector<8x96xbf16>
      %c0_82 = arith.constant 0 : index
      %c0_83 = arith.constant 0 : index
      %127 = vector.load %arg8[%c0_82, %c0_83] : memref<96x64xbf16, #tpu.memory_space<vmem>>, vector<96x64xbf16>
      %cst_84 = arith.constant dense<0.000000e+00> : vector<8x64xf32>
      %128 = tpu.matmul %126, %127, %cst_84 {dimension_numbers = #tpu.dot_dimension_numbers<[1], [0], [0], [1], [0, 0, 1, 1], [], []>} : vector<8x96xbf16>, vector<96x64xbf16>, vector<8x64xf32> -> vector<8x64xf32>
      %c0_85 = arith.constant 0 : index
      %c0_86 = arith.constant 0 : index
      %129 = vector.load %arg9[%c0_85, %c0_86] : memref<1x64xf32, #tpu.memory_space<vmem>>, vector<1x64xf32>
      %130 = vector.broadcast %129 : vector<1x64xf32> to vector<8x64xf32>
      %131 = arith.addf %128, %130 : vector<8x64xf32>
      %132 = math.tanh %131 : vector<8x64xf32>
      %133 = math.tanh %132 : vector<8x64xf32>
      %134 = arith.addf %95, %133 : vector<8x64xf32>
      %c4_i32_87 = arith.constant 4 : i32
      %135 = arith.muli %arg18, %c4_i32_87 : i32
      %c3_i32 = arith.constant 3 : i32
      %136 = arith.addi %135, %c3_i32 : i32
      %137 = arith.index_cast %136 : i32 to index
      %c0_88 = arith.constant 0 : index
      %c0_89 = arith.constant 0 : index
      %138 = vector.load %arg2[%137, %c0_88, %c0_89] : memref<128x8x32xf32, #tpu.memory_space<vmem>>, vector<1x8x32xf32>
      %139 = vector.shape_cast %138 : vector<1x8x32xf32> to vector<8x32xf32>
      %140 = arith.truncf %105 : vector<8x32xf32> to vector<8x32xbf16>
      %c0_90 = arith.constant 0 : index
      %c0_91 = arith.constant 0 : index
      %141 = vector.load %arg3[%c0_90, %c0_91] : memref<32x32xbf16, #tpu.memory_space<vmem>>, vector<32x32xbf16>
      %cst_92 = arith.constant dense<0.000000e+00> : vector<8x32xf32>
      %142 = tpu.matmul %140, %141, %cst_92 {dimension_numbers = #tpu.dot_dimension_numbers<[1], [0], [0], [1], [0, 0, 1, 1], [], []>} : vector<8x32xbf16>, vector<32x32xbf16>, vector<8x32xf32> -> vector<8x32xf32>
      %143 = arith.addf %139, %142 : vector<8x32xf32>
      %144 = math.tanh %143 : vector<8x32xf32>
      %145 = math.tanh %144 : vector<8x32xf32>
      %146 = tpu.concatenate %145, %114 in 1 : vector<8x32xf32>, vector<8x32xf32> -> vector<8x64xf32>
      %147 = arith.truncf %146 : vector<8x64xf32> to vector<8x64xbf16>
      %c0_93 = arith.constant 0 : index
      %c0_94 = arith.constant 0 : index
      %148 = vector.load %arg4[%c0_93, %c0_94] : memref<64x32xbf16, #tpu.memory_space<vmem>>, vector<64x32xbf16>
      %cst_95 = arith.constant dense<0.000000e+00> : vector<8x32xf32>
      %149 = tpu.matmul %147, %148, %cst_95 {dimension_numbers = #tpu.dot_dimension_numbers<[1], [0], [0], [1], [0, 0, 1, 1], [], []>} : vector<8x64xbf16>, vector<64x32xbf16>, vector<8x32xf32> -> vector<8x32xf32>
      %c0_96 = arith.constant 0 : index
      %c0_97 = arith.constant 0 : index
      %150 = vector.load %arg5[%c0_96, %c0_97] : memref<1x32xf32, #tpu.memory_space<vmem>>, vector<1x32xf32>
      %151 = vector.broadcast %150 : vector<1x32xf32> to vector<8x32xf32>
      %152 = arith.addf %149, %151 : vector<8x32xf32>
      %153 = math.tanh %152 : vector<8x32xf32>
      %154 = math.tanh %153 : vector<8x32xf32>
      %155 = tpu.concatenate %154, %123 in 1 : vector<8x32xf32>, vector<8x32xf32> -> vector<8x64xf32>
      %156 = arith.truncf %155 : vector<8x64xf32> to vector<8x64xbf16>
      %c0_98 = arith.constant 0 : index
      %c0_99 = arith.constant 0 : index
      %157 = vector.load %arg6[%c0_98, %c0_99] : memref<64x32xbf16, #tpu.memory_space<vmem>>, vector<64x32xbf16>
      %cst_100 = arith.constant dense<0.000000e+00> : vector<8x32xf32>
      %158 = tpu.matmul %156, %157, %cst_100 {dimension_numbers = #tpu.dot_dimension_numbers<[1], [0], [0], [1], [0, 0, 1, 1], [], []>} : vector<8x64xbf16>, vector<64x32xbf16>, vector<8x32xf32> -> vector<8x32xf32>
      %c0_101 = arith.constant 0 : index
      %c0_102 = arith.constant 0 : index
      %159 = vector.load %arg7[%c0_101, %c0_102] : memref<1x32xf32, #tpu.memory_space<vmem>>, vector<1x32xf32>
      %160 = vector.broadcast %159 : vector<1x32xf32> to vector<8x32xf32>
      %161 = arith.addf %158, %160 : vector<8x32xf32>
      %162 = math.tanh %161 : vector<8x32xf32>
      %163 = math.tanh %162 : vector<8x32xf32>
      %164 = tpu.concatenate %163, %132 in 1 : vector<8x32xf32>, vector<8x64xf32> -> vector<8x96xf32>
      %165 = arith.truncf %164 : vector<8x96xf32> to vector<8x96xbf16>
      %c0_103 = arith.constant 0 : index
      %c0_104 = arith.constant 0 : index
      %166 = vector.load %arg8[%c0_103, %c0_104] : memref<96x64xbf16, #tpu.memory_space<vmem>>, vector<96x64xbf16>
      %cst_105 = arith.constant dense<0.000000e+00> : vector<8x64xf32>
      %167 = tpu.matmul %165, %166, %cst_105 {dimension_numbers = #tpu.dot_dimension_numbers<[1], [0], [0], [1], [0, 0, 1, 1], [], []>} : vector<8x96xbf16>, vector<96x64xbf16>, vector<8x64xf32> -> vector<8x64xf32>
      %c0_106 = arith.constant 0 : index
      %c0_107 = arith.constant 0 : index
      %168 = vector.load %arg9[%c0_106, %c0_107] : memref<1x64xf32, #tpu.memory_space<vmem>>, vector<1x64xf32>
      %169 = vector.broadcast %168 : vector<1x64xf32> to vector<8x64xf32>
      %170 = arith.addf %167, %169 : vector<8x64xf32>
      %171 = math.tanh %170 : vector<8x64xf32>
      %172 = math.tanh %171 : vector<8x64xf32>
      %173 = arith.addf %134, %172 : vector<8x64xf32>
      scf.yield %144, %153, %162, %171, %173 : vector<8x32xf32>, vector<8x32xf32>, vector<8x32xf32>, vector<8x64xf32>, vector<8x64xf32>
    }
    %c32_i32_11 = arith.constant 32 : i32
    %c0_12 = arith.constant 0 : index
    %c0_13 = arith.constant 0 : index
    %10 = vector.load %arg13[%c0_12, %c0_13] : memref<8x32xf32, #tpu.memory_space<vmem>>, vector<8x32xf32>
    tpu.vector_store %arg13[%c0_12, %c0_13], %9#0 {strides = array<i32>} : memref<8x32xf32, #tpu.memory_space<vmem>>, vector<8x32xf32>,
    %c0_14 = arith.constant 0 : index
    %c0_15 = arith.constant 0 : index
    %11 = vector.load %arg14[%c0_14, %c0_15] : memref<8x32xf32, #tpu.memory_space<vmem>>, vector<8x32xf32>
    tpu.vector_store %arg14[%c0_14, %c0_15], %9#1 {strides = array<i32>} : memref<8x32xf32, #tpu.memory_space<vmem>>, vector<8x32xf32>,
    %c0_16 = arith.constant 0 : index
    %c0_17 = arith.constant 0 : index
    %12 = vector.load %arg15[%c0_16, %c0_17] : memref<8x32xf32, #tpu.memory_space<vmem>>, vector<8x32xf32>
    tpu.vector_store %arg15[%c0_16, %c0_17], %9#2 {strides = array<i32>} : memref<8x32xf32, #tpu.memory_space<vmem>>, vector<8x32xf32>,
    %c0_18 = arith.constant 0 : index
    %c0_19 = arith.constant 0 : index
    %13 = vector.load %arg16[%c0_18, %c0_19] : memref<8x64xf32, #tpu.memory_space<vmem>>, vector<8x64xf32>
    tpu.vector_store %arg16[%c0_18, %c0_19], %9#3 {strides = array<i32>} : memref<8x64xf32, #tpu.memory_space<vmem>>, vector<8x64xf32>,
    %c0_20 = arith.constant 0 : index
    %c0_21 = arith.constant 0 : index
    %14 = vector.load %arg17[%c0_20, %c0_21] : memref<8x64xf32, #tpu.memory_space<vmem>>, vector<8x64xf32>
    tpu.vector_store %arg17[%c0_20, %c0_21], %9#4 {strides = array<i32>} : memref<8x64xf32, #tpu.memory_space<vmem>>, vector<8x64xf32>,
    %c1_i32_22 = arith.constant 1 : i32
    %15 = arith.cmpi eq, %arg1, %c1_i32_22 : i32
    %16 = arith.extui %15 : i1 to i32
    %c0_i32_23 = arith.constant 0 : i32
    %17 = arith.cmpi ne, %16, %c0_i32_23 : i32
    scf.if %17 {
      %c0_24 = arith.constant 0 : index
      %c0_25 = arith.constant 0 : index
      %18 = vector.load %arg17[%c0_24, %c0_25] : memref<8x64xf32, #tpu.memory_space<vmem>>, vector<8x64xf32>
      %cst = arith.constant 3.906250e-03 : f32
      %19 = vector.broadcast %cst : f32 to vector<8x64xf32>
      %20 = arith.mulf %18, %19 : vector<8x64xf32>
      %c0_26 = arith.constant 0 : index
      %c0_27 = arith.constant 0 : index
      %21 = vector.load %arg10[%c0_26, %c0_27] : memref<64x2xf32, #tpu.memory_space<vmem>>, vector<64x2xf32>
      %cst_28 = arith.constant dense<0.000000e+00> : vector<8x2xf32>
      %22 = tpu.matmul %20, %21, %cst_28 {dimension_numbers = #tpu.dot_dimension_numbers<[1], [0], [0], [1], [0, 0, 1, 1], [], []>} : vector<8x64xf32>, vector<64x2xf32>, vector<8x2xf32> -> vector<8x2xf32>
      %c0_29 = arith.constant 0 : index
      %c0_30 = arith.constant 0 : index
      %23 = vector.load %arg11[%c0_29, %c0_30] : memref<1x2xf32, #tpu.memory_space<vmem>>, vector<1x2xf32>
      %24 = vector.broadcast %23 : vector<1x2xf32> to vector<8x2xf32>
      %25 = arith.addf %22, %24 : vector<8x2xf32>
      %c0_31 = arith.constant 0 : index
      %c0_32 = arith.constant 0 : index
      %26 = vector.load %arg12[%c0_31, %c0_32] : memref<8x2xf32, #tpu.memory_space<vmem>>, vector<8x2xf32>
      tpu.vector_store %arg12[%c0_31, %c0_32], %25 {strides = array<i32>} : memref<8x2xf32, #tpu.memory_space<vmem>>, vector<8x2xf32>,
    } else {
    }
    return
  }
  func.func @transform_0(%arg0: i32, %arg1: i32) -> (i32, i32, i32) {
    %c0_i32 = arith.constant 0 : i32
    %c0_i32_0 = arith.constant 0 : i32
    return %arg1, %arg0, %c0_i32 : i32, i32, i32
  }
  func.func @transform_1(%arg0: i32, %arg1: i32) -> (i32, i32) {
    %c0_i32 = arith.constant 0 : i32
    %c0_i32_0 = arith.constant 0 : i32
    %c0_i32_1 = arith.constant 0 : i32
    return %c0_i32, %c0_i32_0 : i32, i32
  }
  func.func @transform_2(%arg0: i32, %arg1: i32) -> (i32, i32) {
    %c0_i32 = arith.constant 0 : i32
    %c0_i32_0 = arith.constant 0 : i32
    %c0_i32_1 = arith.constant 0 : i32
    return %c0_i32, %c0_i32_0 : i32, i32
  }
  func.func @transform_3(%arg0: i32, %arg1: i32) -> (i32, i32) {
    %c0_i32 = arith.constant 0 : i32
    %c0_i32_0 = arith.constant 0 : i32
    %c0_i32_1 = arith.constant 0 : i32
    return %c0_i32, %c0_i32_0 : i32, i32
  }
  func.func @transform_4(%arg0: i32, %arg1: i32) -> (i32, i32) {
    %c0_i32 = arith.constant 0 : i32
    %c0_i32_0 = arith.constant 0 : i32
    %c0_i32_1 = arith.constant 0 : i32
    return %c0_i32, %c0_i32_0 : i32, i32
  }
  func.func @transform_5(%arg0: i32, %arg1: i32) -> (i32, i32) {
    %c0_i32 = arith.constant 0 : i32
    %c0_i32_0 = arith.constant 0 : i32
    %c0_i32_1 = arith.constant 0 : i32
    return %c0_i32, %c0_i32_0 : i32, i32
  }
  func.func @transform_6(%arg0: i32, %arg1: i32) -> (i32, i32) {
    %c0_i32 = arith.constant 0 : i32
    %c0_i32_0 = arith.constant 0 : i32
    %c0_i32_1 = arith.constant 0 : i32
    return %c0_i32, %c0_i32_0 : i32, i32
  }
  func.func @transform_7(%arg0: i32, %arg1: i32) -> (i32, i32) {
    %c0_i32 = arith.constant 0 : i32
    %c0_i32_0 = arith.constant 0 : i32
    %c0_i32_1 = arith.constant 0 : i32
    return %c0_i32, %c0_i32_0 : i32, i32
  }
  func.func @transform_8(%arg0: i32, %arg1: i32) -> (i32, i32) {
    %c0_i32 = arith.constant 0 : i32
    %c0_i32_0 = arith.constant 0 : i32
    %c0_i32_1 = arith.constant 0 : i32
    return %c0_i32, %c0_i32_0 : i32, i32
  }
  func.func @transform_9(%arg0: i32, %arg1: i32) -> (i32, i32) {
    %c0_i32 = arith.constant 0 : i32
    %c0_i32_0 = arith.constant 0 : i32
    %c0_i32_1 = arith.constant 0 : i32
    return %c0_i32, %c0_i32_0 : i32, i32
  }
  func.func @transform_10(%arg0: i32, %arg1: i32) -> (i32, i32) {
    %c0_i32 = arith.constant 0 : i32
    %c0_i32_0 = arith.constant 0 : i32
    return %arg0, %c0_i32 : i32, i32
  }
}

</mosaic_0001>

<bundles_post_ra>
// kernel: tpu_custom_call.1
= control target key start
LH: loop header
LB: loop body
LE: loop exit
PB: predicated region body
PF: predicated region fallthrough
CT: control target
= control target key end

     0   :  { %s2250_s13 = smov 0   ;;  %s2252_s14 = smov 0   ;;  %s2699_s0 = inlined_call_operand.vmem [shape: f32[256,8,32], index: 0, kind: input, shape index: {}]   ;;  %s2700_s1 = inlined_call_operand.vmem [shape: bf16[32,32], index: 1, kind: input, shape index: {}]   ;;  %s2701_s2 = inlined_call_operand.vmem [shape: bf16[64,32], index: 2, kind: input, shape index: {}]   ;;  %s2702_s3 = inlined_call_operand.vmem [shape: f32[1,32], index: 3, kind: input, shape index: {}]   ;;  %s2703_s4 = inlined_call_operand.vmem [shape: bf16[64,32], index: 4, kind: input, shape index: {}]   ;;  %s2704_s5 = inlined_call_operand.vmem [shape: f32[1,32], index: 5, kind: input, shape index: {}]   ;;  %s2705_s6 = inlined_call_operand.vmem [shape: bf16[96,64], index: 6, kind: input, shape index: {}]   ;;  %s2706_s7 = inlined_call_operand.vmem [shape: f32[1,64], index: 7, kind: input, shape index: {}]   ;;  %s2707_s8 = inlined_call_operand.vmem [shape: f32[64,2], index: 8, kind: input, shape index: {}]   ;;  %s2708_s9 = inlined_call_operand.vmem [shape: f32[1,2], index: 9, kind: input, shape index: {}]   ;;  %s2709_s10 = inlined_call_operand.vmem [shape: f32[8,2], index: 10, kind: output, shape index: {}]  }
   0x1   :  { %s2254_s15 = smov 0  }
   0x2 LB: > { %s29_s16 = sadd.s32 1, %s2158_s14  ;;  %p1585_p0 = scmp.ge.s32.totalorder %s2162_s15, 1  ;;  %s2162_s15 = sphi %s2254_s15, %s20_s15   ;;  %s2158_s14 = sphi %s2252_s14, %s2717_s14   ;;  %s2154_s13 = sphi %s2250_s13, %s2716_s13  }
   0x3   : > { %p30_p1 = scmp.ge.s32.totalorder %s29_s16, 2  ;;  %p330_p2 = scmp.lt.s32.totalorder %s2162_s15, 3 }
   0x5   : > { %s2719_s16 = smov (%p30_p1, %s29_s16), 0  ;;  %p331_p3 = pnand %p1585_p0, %p330_p2 }
   0x6   : > { %s1586_s17 = sshll.u32 (!%p331_p3), %s2154_s13, 7  ;;  %p1588_p5 = scmp.ne.s32.totalorder (!%p331_p3), %s2154_s13, 0 }
   0x7   : > { %334 = sbr.rel (%p331_p3) target bundleno = 2683 (0xa7b), region = 60  ;;  %p371_p4 = scmp.lt.s32.totalorder (!%p331_p3), %s1586_s17, 255 }
   0xe   : > { %s2721_s17 = smov (!%p371_p4, %s1586_s17), 255  ;;  %387 = sbr.rel (%p1588_p5) target bundleno = 21 (0x15), region = 64 }
   0xf   : > { %s1587_s18 = sshll.u32 %s2721_s17, 3  ;;  %vm388_vm0 = vcmask (!%p1588_p5), 261120   ;;  %vm392_vm1 = vcmask (!%p1588_p5), 523264   ;;  %v2188_v0 = vmov (!%p1588_p5), 0.0  }
  0x10   : > { %s2274_s21 = scalar_lea.vmem %s2699_s0, %s1587_s18  ;;  %389 = vst.msk [vmem:[#allocation2] sm:$0xff] (!%p1588_p5), %vm388_vm0, %v2188_v0  ;;  %390 = vst.msk [vmem:[#allocation3] sm:$0xff] (!%p1588_p5), %vm388_vm0, %v2188_v0 }
  0x11   : > { %391 = vst.msk [vmem:[#allocation4] sm:$0xff] (!%p1588_p5), %vm388_vm0, %v2188_v0 }
  0x12   : > { %393 = vst.msk [vmem:[#allocation5] sm:$0xff] (!%p1588_p5), %vm392_vm1, %v2188_v0  ;;  %394 = vst.msk [vmem:[#allocation6] sm:$0xff] (!%p1588_p5), %vm392_vm1, %v2188_v0 }
  0x15 PF: > { %s2287_s22 = smov 0  }
  0x17   : > { %v395_v1 = vld [vmem:[#allocation2] sm:$0xff]   ;;  %v396_v2 = vld [vmem:[#allocation3] sm:$0xff]  }
  0x18   : > { %v397_v3 = vld [vmem:[#allocation4] sm:$0xff]  }
  0x19   : > { %v398_v4 = vld [vmem:[#allocation5] sm:$0xff]   ;;  %v399_v5 = vld [vmem:[#allocation6] sm:$0xff]  }
  0x1a LB: >> { %v2304_v6 = vld [vmem:[%s2700_s1] sm:$0xff]   ;;  %v2189_v7 = vmov 0.0   ;;  %v2312_v8 = vld [vmem:[%s2700_s1 + $0x8] sm:$0xff]   ;;  %vm2190_vm2 = vmmov 0   ;;  %s2191_s27 = smov 32   ;;  %vm432_vm3 = vcmask 261120   ;;  %v415_v9 = vpack.c.bf16 %v2182_v1, %v2182_v1  ;;  %s2186_s22 = sphi %s2287_s22, %s405_s22   ;;  %v2182_v1 = vphi %v395_v1, %v2715_v1   ;;  %v2178_v2 = vphi %v396_v2, %v2714_v2   ;;  %v2174_v3 = vphi %v397_v3, %v2713_v3   ;;  %v2170_v4 = vphi %v398_v4, %v2712_v4   ;;  %v2166_v5 = vphi %v399_v5, %v2711_v5  }
  0x1b   : >> { %1734 = vmatprep.subr.bf16.mxu1 %v2189_v7  ;;  %1754 = vmatprep.subr.bf16.mxu0 %v2189_v7  ;;  %v2328_v10 = vld [vmem:[%s2701_s2] sm:$0xff]   ;;  %v2335_v11 = vld [vmem:[%s2701_s2 + $0x8] sm:$0xff]   ;;  %v2341_v12 = vld [vmem:[%s2701_s2 + $0x10] sm:$0xff]   ;;  %s1641_s20 = sshll.u32 %s2186_s22, 5  ;;  %vm524_vm4 = vcmask 523264   ;;  %vm721_vm5 = vcmask 785408  }
  0x1c   : >> { %1735 = vmatpush3.bf16.msra.mxu1 %v2304_v6  ;;  %1738 = vmatprep.mubr.msk.bf16.mxu1 %vm2190_vm2, %v2189_v7  ;;  %v2349_v13 = vld [vmem:[%s2701_s2 + $0x18] sm:$0xff]   ;;  %s2356_s23 = scalar_lea.vmem %s2274_s21, %s1641_s20  ;;  %v2366_v25 = vld [vmem:[%s2703_s4] sm:$0xff]   ;;  %v2373_v26 = vld [vmem:[%s2703_s4 + $0x8] sm:$0xff]   ;;  %s405_s22 = sadd.s32 1, %s2186_s22  }
  0x1d   : >> { %1736 = vmatprep.subr.bf16.mxu1 %v2189_v7  ;;  %480 = vrot.lane.b32.xlu0 %v2178_v2, %s2191_s27  ;;  %v414_v14 = vld [vmem:[%s2356_s23] sm:$0xff]  ;;  %v2379_v27 = vld [vmem:[%s2703_s4 + $0x10] sm:$0xff]   ;;  %v2386_v28 = vld [vmem:[%s2703_s4 + $0x18] sm:$0xff]   ;;  %p402_p6 = scmp.ge.s32.totalorder %s405_s22, 32  }
  0x1e   : >> { %1762 = vmatprep.mubr.msk.bf16.mxu0 %vm2190_vm2, %v2189_v7  ;;  %1755 = vmatpush3.bf16.msra.mxu0 %v2366_v25  ;;  %v2394_v29 = vld [vmem:[%s2702_s3] ss:$0 sm:$0xff]  ;;  %v2429_v42 = vld [vmem:[%s2705_s6 + $0x8] sm:$0xff]   ;;  %v2436_v43 = vld [vmem:[%s2705_s6 + $0x10] sm:$0xff]   ;;  %p1635_p7 = scmp.ne.s32.totalorder (%p402_p6), %s2154_s13, 1 }
  0x1f   : >> { %1756 = vmatprep.subr.bf16.mxu0 %v2189_v7  ;;  %v2422_v41 = vld [vmem:[%s2705_s6] sm:$0xff]   ;;  %v2443_v44 = vld [vmem:[%s2705_s6 + $0x18] sm:$0xff]   ;;  %v2457_v46 = vld [vmem:[%s2705_s6 + $0x28] sm:$0xff]  }
  0x20   : >> { %1737 = vmatpush3.bf16.msra.mxu1 %v2312_v8  ;;  %v2450_v45 = vld [vmem:[%s2705_s6 + $0x20] sm:$0xff]   ;;  %v1616_v53 = vld [vmem:[%s2356_s23 + $0x8] sm:$0xff] }
  0x21   : >> { %1742 = vmatprep.subr.bf16.mxu1 %v2189_v7  ;;  %571 = vrot.lane.b32.xlu0 %v2174_v3, %s2191_s27  ;;  %v2464_v47 = vld [vmem:[%s2704_s5] ss:$0 sm:$0xff] }
  0x22   : >> { %1757 = vmatpush3.bf16.msra.mxu0 %v2373_v26 }
  0x23   : >> { %1739 = vmatmul.mubr.msk.bf16.vlgmr.msra.gmra.mrb[0].mxu1 %vm432_vm3, %v415_v9  ;;  %1758 = vmatprep.subr.bf16.mxu0 %v2189_v7  ;;  %v2503_v9 = vld [vmem:[%s2706_s7] ss:$0 sm:$0xff] }
  0x24   : >> { %1750 = vmatprep.mubr.msk.bf16.mxu1 %vm2190_vm2, %v2189_v7  ;;  %1743 = vmatpush3.bf16.msra.mxu1 %v2328_v10 }
  0x25   : >> { %1744 = vmatprep.subr.bf16.mxu1 %v2189_v7 }
  0x26   : >> { %1759 = vmatpush3.bf16.msra.mxu0 %v2379_v27 }
  0x27   : >> { %1760 = vmatprep.subr.bf16.mxu0 %v2189_v7 }
  0x28   : >> { %1745 = vmatpush3.bf16.msra.mxu1 %v2335_v11 }
  0x29   : >> { %1746 = vmatprep.subr.bf16.mxu1 %v2189_v7 }
  0x2a   : >> { %1761 = vmatpush3.bf16.msra.mxu0 %v2386_v28 }
  0x2b   : >> { %1782 = vmatprep.subr.bf16.mxu0 %v2189_v7 }
  0x2c   : >> { %1747 = vmatpush3.bf16.msra.mxu1 %v2341_v12 }
  0x2d   : >> { %1748 = vmatprep.subr.bf16.mxu1 %v2189_v7 }
  0x30   : >> { %1749 = vmatpush3.bf16.msra.mxu1 %v2349_v13 }
  0x31   : >> { %1766 = vmatprep.subr.bf16.mxu1 %v2189_v7 }
  0x8f   : >> { %v481_v21 = vpop.permute.xlu0 %480 }
  0x93   : >> { %v572_v36 = vpop.permute.xlu0 %571 }
  0xf6   : >> { %v470_v15 = vpop.f32.mrb[0].mxu1 }
  0xf7   : >> { %v476_v16 = vadd.f32 %v470_v15, %v414_v14  ;;  %v1740_v17 = vpop.f32.mrb[1].mxu1 }
  0xf8   : >> { %v473_v18 = vpop.f32.mrb[2].mxu1 }
  0xf9   : >> { %2052 = vtanh.f32 %v476_v16  ;;  %v1741_v19 = vpop.f32.mrb[3].mxu1 }
 0x103   : >> { %v2053_v20 = vpop.eup %2052 }
 0x104   : >> { %2054 = vtanh.f32 %v2053_v20  ;;  %v772_v40 = vpack.c.bf16 %v2053_v20, %v2053_v20 }
 0x10e   : >> { %v2055_v22 = vpop.eup %2054 }
 0x10f   : >> { %v483_v23 = vsel %vm432_vm3, %v2055_v22, %v481_v21 }
 0x110   : >> { %v484_v24 = vpack.c.bf16 %v483_v23, %v483_v23 }
 0x112   : >> { %1751 = vmatmul.mubr.msk.bf16.vlgmr.msra.gmra.mrb[4].mxu1 %vm524_vm4, %v484_v24 }
 0x113   : >> { %1778 = vmatprep.mubr.msk.bf16.mxu1 %vm2190_vm2, %v2189_v7  ;;  %1767 = vmatpush3.bf16.msra.mxu1 %v2422_v41 }
 0x114   : >> { %1768 = vmatprep.subr.bf16.mxu1 %v2189_v7 }
 0x117   : >> { %1769 = vmatpush3.bf16.msra.mxu1 %v2429_v42 }
 0x118   : >> { %1770 = vmatprep.subr.bf16.mxu1 %v2189_v7 }
 0x11b   : >> { %1771 = vmatpush3.bf16.msra.mxu1 %v2436_v43 }
 0x11c   : >> { %1772 = vmatprep.subr.bf16.mxu1 %v2189_v7 }
 0x11f   : >> { %1773 = vmatpush3.bf16.msra.mxu1 %v2443_v44 }
 0x120   : >> { %1774 = vmatprep.subr.bf16.mxu1 %v2189_v7 }
 0x123   : >> { %1775 = vmatpush3.bf16.msra.mxu1 %v2450_v45 }
 0x124   : >> { %1776 = vmatprep.subr.bf16.mxu1 %v2189_v7 }
 0x127   : >> { %1777 = vmatpush3.bf16.msra.mxu1 %v2457_v46 }
 0x128   : >> { %1802 = vmatprep.subr.bf16.mxu1 %v2189_v7 }
 0x1e5   : >> { %v562_v30 = vpop.f32.mrb[4].mxu1 }
 0x1e6   : >> { %v563_v31 = vadd.f32 %v2394_v29, %v562_v30  ;;  %v1752_v32 = vpop.f32.mrb[5].mxu1 }
 0x1e7   : >> { %v565_v33 = vpop.f32.mrb[6].mxu1 }
 0x1e8   : >> { %2056 = vtanh.f32 %v563_v31  ;;  %v1753_v34 = vpop.f32.mrb[7].mxu1 }
 0x1f2   : >> { %v2057_v35 = vpop.eup %2056 }
 0x1f3   : >> { %2058 = vtanh.f32 %v2057_v35  ;;  %820 = vrot.lane.b32.xlu1 %v2057_v35, %s2191_s27 }
 0x1f7   : >> { %661 = vrot.lane.b32.xlu1 %v2170_v4, %s2191_s27 }
 0x1fd   : >> { %v2059_v37 = vpop.eup %2058 }
 0x1fe   : >> { %v574_v38 = vsel %vm432_vm3, %v2059_v37, %v572_v36 }
 0x1ff   : >> { %v575_v39 = vpack.c.bf16 %v574_v38, %v574_v38 }
 0x201   : >> { %1763 = vmatmul.mubr.msk.bf16.vlgmr.msra.gmra.mrb[0].mxu0 %vm524_vm4, %v575_v39 }
 0x202   : >> { %1783 = vmatpush3.bf16.msra.mxu0 %v2304_v6  ;;  %1786 = vmatprep.mubr.msk.bf16.mxu0 %vm2190_vm2, %v2189_v7 }
 0x203   : >> { %1784 = vmatprep.subr.bf16.mxu0 %v2189_v7 }
 0x206   : >> { %1785 = vmatpush3.bf16.msra.mxu0 %v2312_v8 }
 0x207   : >> { %1790 = vmatprep.subr.bf16.mxu0 %v2189_v7 }
 0x209   : >> { %1787 = vmatmul.mubr.msk.bf16.vlgmr.msra.gmra.mrb[4].mxu0 %vm432_vm3, %v772_v40 }
 0x20a   : >> { %1791 = vmatpush3.bf16.msra.mxu0 %v2328_v10  ;;  %1798 = vmatprep.mubr.msk.bf16.mxu0 %vm2190_vm2, %v2189_v7 }
 0x20b   : >> { %1792 = vmatprep.subr.bf16.mxu0 %v2189_v7 }
 0x20e   : >> { %1793 = vmatpush3.bf16.msra.mxu0 %v2335_v11 }
 0x20f   : >> { %1794 = vmatprep.subr.bf16.mxu0 %v2189_v7 }
 0x212   : >> { %1795 = vmatpush3.bf16.msra.mxu0 %v2341_v12 }
 0x213   : >> { %1796 = vmatprep.subr.bf16.mxu0 %v2189_v7 }
 0x216   : >> { %1797 = vmatpush3.bf16.msra.mxu0 %v2349_v13 }
 0x217   : >> { %1814 = vmatprep.subr.bf16.mxu0 %v2189_v7 }
 0x265   : >> { %v821_v60 = vpop.permute.xlu1 %820 }
 0x269   : >> { %v662_v62 = vpop.permute.xlu1 %661 }
 0x2d4   : >> { %v652_v48 = vpop.f32.mrb[0].mxu0 }
 0x2d5   : >> { %v653_v49 = vadd.f32 %v2464_v47, %v652_v48  ;;  %v1764_v50 = vpop.f32.mrb[1].mxu0  ;;  %v1623_v48 = vld [vmem:[%s2356_s23 + $0x10] sm:$0xff] }
 0x2d6   : >> { %v655_v51 = vpop.f32.mrb[2].mxu0 }
 0x2d7   : >> { %2060 = vtanh.f32 %v653_v49  ;;  %v1765_v52 = vpop.f32.mrb[3].mxu0 }
 0x2dc   : >> { %v810_v54 = vpop.f32.mrb[4].mxu0 }
 0x2dd   : >> { %v816_v55 = vadd.f32 %v1616_v53, %v810_v54  ;;  %v1788_v56 = vpop.f32.mrb[5].mxu0 }
 0x2de   : >> { %v813_v57 = vpop.f32.mrb[6].mxu0 }
 0x2df   : >> { %2062 = vtanh.f32 %v816_v55  ;;  %v1789_v58 = vpop.f32.mrb[7].mxu0 }
 0x2e1   : >> { %v2061_v59 = vpop.eup %2060 }
 0x2e2   : >> { %2064 = vtanh.f32 %v2061_v59  ;;  %871 = vrot.lane.b32.xlu0 %v2061_v59, %s2191_s27 }
 0x2e9   : >> { %v2469_v61 = vpop.eup %2062 }
 0x2ea   : >> { %2066 = vtanh.f32 %v2469_v61  ;;  %v977_v35 = vpack.c.bf16 %v2469_v61, %v2469_v61 }
 0x2ec   : >> { %v2065_v63 = vpop.eup %2064 }
 0x2ed   : >> { %v664_v0 = vsel %vm432_vm3, %v2065_v63, %v662_v62 }
 0x2ee   : >> { %v665_v1 = vpack.c.bf16 %v664_v0, %v664_v0 }
 0x2f0   : >> { %1779 = vmatmul.mubr.msk.bf16.vlgmr.msra.gmra.mrb[8].mxu1 %vm721_vm5, %v665_v1 }
 0x2f1   : >> { %1803 = vmatpush3.bf16.msra.mxu1 %v2366_v25  ;;  %1810 = vmatprep.mubr.msk.bf16.mxu1 %vm2190_vm2, %v2189_v7 }
 0x2f2   : >> { %1804 = vmatprep.subr.bf16.mxu1 %v2189_v7 }
 0x2f4   : >> { %v2067_v2 = vpop.eup %2066 }
 0x2f5   : >> { %v823_v3 = vsel %vm432_vm3, %v2067_v2, %v821_v60  ;;  %1805 = vmatpush3.bf16.msra.mxu1 %v2373_v26 }
 0x2f6   : >> { %v824_v4 = vpack.c.bf16 %v823_v3, %v823_v3  ;;  %1806 = vmatprep.subr.bf16.mxu1 %v2189_v7 }
 0x2f8   : >> { %1799 = vmatmul.mubr.msk.bf16.vlgmr.msra.gmra.mrb[8].mxu0 %vm524_vm4, %v824_v4 }
 0x2f9   : >> { %1807 = vmatpush3.bf16.msra.mxu1 %v2379_v27  ;;  %1815 = vmatpush3.bf16.msra.mxu0 %v2422_v41 }
 0x2fa   : >> { %1808 = vmatprep.subr.bf16.mxu1 %v2189_v7  ;;  %1816 = vmatprep.subr.bf16.mxu0 %v2189_v7 }
 0x2fb   : >> { %1826 = vmatprep.mubr.msk.bf16.mxu0 %vm2190_vm2, %v2189_v7 }
 0x2fd   : >> { %1809 = vmatpush3.bf16.msra.mxu1 %v2386_v28  ;;  %1817 = vmatpush3.bf16.msra.mxu0 %v2429_v42 }
 0x2fe   : >> { %1830 = vmatprep.subr.bf16.mxu1 %v2189_v7  ;;  %1818 = vmatprep.subr.bf16.mxu0 %v2189_v7 }
 0x301   : >> { %1819 = vmatpush3.bf16.msra.mxu0 %v2436_v43 }
 0x302   : >> { %1820 = vmatprep.subr.bf16.mxu0 %v2189_v7 }
 0x305   : >> { %1821 = vmatpush3.bf16.msra.mxu0 %v2443_v44 }
 0x306   : >> { %1822 = vmatprep.subr.bf16.mxu0 %v2189_v7 }
 0x309   : >> { %1823 = vmatpush3.bf16.msra.mxu0 %v2450_v45 }
 0x30a   : >> { %1824 = vmatprep.subr.bf16.mxu0 %v2189_v7 }
 0x30d   : >> { %1825 = vmatpush3.bf16.msra.mxu0 %v2457_v46 }
 0x30e   : >> { %1850 = vmatprep.subr.bf16.mxu0 %v2189_v7 }
 0x354   : >> { %v872_v32 = vpop.permute.xlu0 %871 }
 0x3c3   : >> { %v759_v14 = vpop.f32.mrb[8].mxu1 }
 0x3c4   : >> { %v760_v15 = vadd.f32 %v2503_v9, %v759_v14  ;;  %v1780_v16 = vpop.f32.mrb[9].mxu1 }
 0x3c5   : >> { %v762_v17 = vpop.f32.mrb[10].mxu1 }
 0x3c6   : >> { %2068 = vtanh.f32 %v760_v15  ;;  %v1781_v18 = vpop.f32.mrb[11].mxu1 }
 0x3cb   : >> { %v862_v19 = vpop.f32.mrb[8].mxu0 }
 0x3cc   : >> { %v863_v20 = vadd.f32 %v2394_v29, %v862_v19  ;;  %v1800_v21 = vpop.f32.mrb[9].mxu0 }
 0x3cd   : >> { %v865_v22 = vpop.f32.mrb[10].mxu0 }
 0x3ce   : >> { %2070 = vtanh.f32 %v863_v20  ;;  %v1801_v23 = vpop.f32.mrb[11].mxu0 }
 0x3d0   : >> { %v2507_v24 = vpop.eup %2068 }
 0x3d1   : >> { %922 = vrot.lane.b32.xlu0 %v2507_v24, %s2191_s27 }
 0x3d8   : >> { %v2071_v30 = vpop.eup %2070 }
 0x3d9   : >> { %2072 = vtanh.f32 %v2071_v30  ;;  %1025 = vrot.lane.b32.xlu1 %v2071_v30, %s2191_s27 }
 0x3e3   : >> { %v2073_v31 = vpop.eup %2072 }
 0x3e4   : >> { %v874_v33 = vsel %vm432_vm3, %v2073_v31, %v872_v32 }
 0x3e5   : >> { %v875_v34 = vpack.c.bf16 %v874_v33, %v874_v33 }
 0x3e7   : >> { %1811 = vmatmul.mubr.msk.bf16.vlgmr.msra.gmra.mrb[12].mxu1 %vm524_vm4, %v875_v34 }
 0x3e8   : >> { %1831 = vmatpush3.bf16.msra.mxu1 %v2304_v6  ;;  %1834 = vmatprep.mubr.msk.bf16.mxu1 %vm2190_vm2, %v2189_v7 }
 0x3e9   : >> { %1832 = vmatprep.subr.bf16.mxu1 %v2189_v7 }
 0x3ec   : >> { %1833 = vmatpush3.bf16.msra.mxu1 %v2312_v8 }
 0x3ed   : >> { %1838 = vmatprep.subr.bf16.mxu1 %v2189_v7 }
 0x3ef   : >> { %1835 = vmatmul.mubr.msk.bf16.vlgmr.msra.gmra.mrb[16].mxu1 %vm432_vm3, %v977_v35 }
 0x3f0   : >> { %1839 = vmatpush3.bf16.msra.mxu1 %v2328_v10  ;;  %1846 = vmatprep.mubr.msk.bf16.mxu1 %vm2190_vm2, %v2189_v7 }
 0x3f1   : >> { %1840 = vmatprep.subr.bf16.mxu1 %v2189_v7 }
 0x3f4   : >> { %1841 = vmatpush3.bf16.msra.mxu1 %v2335_v11 }
 0x3f5   : >> { %1842 = vmatprep.subr.bf16.mxu1 %v2189_v7 }
 0x3f8   : >> { %1843 = vmatpush3.bf16.msra.mxu1 %v2341_v12 }
 0x3f9   : >> { %1844 = vmatprep.subr.bf16.mxu1 %v2189_v7 }
 0x3fc   : >> { %1845 = vmatpush3.bf16.msra.mxu1 %v2349_v13 }
 0x3fd   : >> { %1862 = vmatprep.subr.bf16.mxu1 %v2189_v7 }
 0x443   : >> { %v923_v57 = vpop.permute.xlu0 %922 }
 0x44b   : >> { %v1026_v61 = vpop.permute.xlu1 %1025 }
 0x4ba   : >> { %v913_v36 = vpop.f32.mrb[12].mxu1 }
 0x4bb   : >> { %v914_v37 = vadd.f32 %v2464_v47, %v913_v36  ;;  %v1812_v38 = vpop.f32.mrb[13].mxu1  ;;  %v1630_v36 = vld [vmem:[%s2356_s23 + $0x18] sm:$0xff] }
 0x4bc   : >> { %v916_v39 = vpop.f32.mrb[14].mxu1 }
 0x4bd   : >> { %2074 = vtanh.f32 %v914_v37  ;;  %v1813_v40 = vpop.f32.mrb[15].mxu1 }
 0x4c2   : >> { %v1015_v49 = vpop.f32.mrb[16].mxu1 }
 0x4c3   : >> { %v1021_v50 = vadd.f32 %v1623_v48, %v1015_v49  ;;  %v1836_v51 = vpop.f32.mrb[17].mxu1 }
 0x4c4   : >> { %v1018_v52 = vpop.f32.mrb[18].mxu1 }
 0x4c5   : >> { %2076 = vtanh.f32 %v1021_v50  ;;  %v1837_v53 = vpop.f32.mrb[19].mxu1 }
 0x4c7   : >> { %v2075_v54 = vpop.eup %2074 }
 0x4c8   : >> { %2078 = vtanh.f32 %v2075_v54  ;;  %1076 = vrot.lane.b32.xlu1 %v2075_v54, %s2191_s27 }
 0x4cf   : >> { %v2536_v55 = vpop.eup %2076 }
 0x4d0   : >> { %2080 = vtanh.f32 %v2536_v55 }
 0x4d2   : >> { %v2079_v56 = vpop.eup %2078 }
 0x4d3   : >> { %v925_v58 = vsel %vm432_vm3, %v2079_v56, %v923_v57 }
 0x4d4   : >> { %v926_v59 = vpack.c.bf16 %v925_v58, %v925_v58 }
 0x4d6   : >> { %1827 = vmatmul.mubr.msk.bf16.vlgmr.msra.gmra.mrb[12].mxu0 %vm721_vm5, %v926_v59 }
 0x4d7   : >> { %1851 = vmatpush3.bf16.msra.mxu0 %v2366_v25  ;;  %1858 = vmatprep.mubr.msk.bf16.mxu0 %vm2190_vm2, %v2189_v7 }
 0x4d8   : >> { %1852 = vmatprep.subr.bf16.mxu0 %v2189_v7 }
 0x4da   : >> { %v2081_v60 = vpop.eup %2080 }
 0x4db   : >> { %v1028_v62 = vsel %vm432_vm3, %v2081_v60, %v1026_v61  ;;  %1853 = vmatpush3.bf16.msra.mxu0 %v2373_v26 }
 0x4dc   : >> { %v1029_v63 = vpack.c.bf16 %v1028_v62, %v1028_v62  ;;  %1854 = vmatprep.subr.bf16.mxu0 %v2189_v7 }
 0x4de   : >> { %1847 = vmatmul.mubr.msk.bf16.vlgmr.msra.gmra.mrb[20].mxu1 %vm524_vm4, %v1029_v63 }
 0x4df   : >> { %1855 = vmatpush3.bf16.msra.mxu0 %v2379_v27  ;;  %1863 = vmatpush3.bf16.msra.mxu1 %v2422_v41 }
 0x4e0   : >> { %1856 = vmatprep.subr.bf16.mxu0 %v2189_v7  ;;  %1864 = vmatprep.subr.bf16.mxu1 %v2189_v7 }
 0x4e1   : >> { %1874 = vmatprep.mubr.msk.bf16.mxu1 %vm2190_vm2, %v2189_v7 }
 0x4e3   : >> { %1857 = vmatpush3.bf16.msra.mxu0 %v2386_v28  ;;  %1865 = vmatpush3.bf16.msra.mxu1 %v2429_v42 }
 0x4e4   : >> { %1878 = vmatprep.subr.bf16.mxu0 %v2189_v7  ;;  %1866 = vmatprep.subr.bf16.mxu1 %v2189_v7 }
 0x4e7   : >> { %1867 = vmatpush3.bf16.msra.mxu1 %v2436_v43 }
 0x4e8   : >> { %1868 = vmatprep.subr.bf16.mxu1 %v2189_v7 }
 0x4eb   : >> { %1869 = vmatpush3.bf16.msra.mxu1 %v2443_v44 }
 0x4ec   : >> { %1870 = vmatprep.subr.bf16.mxu1 %v2189_v7 }
 0x4ef   : >> { %1871 = vmatpush3.bf16.msra.mxu1 %v2450_v45 }
 0x4f0   : >> { %1872 = vmatprep.subr.bf16.mxu1 %v2189_v7 }
 0x4f3   : >> { %1873 = vmatpush3.bf16.msra.mxu1 %v2457_v46 }
 0x4f4   : >> { %1898 = vmatprep.subr.bf16.mxu1 %v2189_v7 }
 0x53a   : >> { %v1077_v32 = vpop.permute.xlu1 %1076 }
 0x5a9   : >> { %v964_v0 = vpop.f32.mrb[12].mxu0 }
 0x5aa   : >> { %v965_v1 = vadd.f32 %v2503_v9, %v964_v0  ;;  %v1828_v2 = vpop.f32.mrb[13].mxu0 }
 0x5ab   : >> { %v967_v3 = vpop.f32.mrb[14].mxu0 }
 0x5ac   : >> { %2082 = vtanh.f32 %v965_v1  ;;  %v1829_v4 = vpop.f32.mrb[15].mxu0 }
 0x5ad   : >> { %2084 = vtanh.f32 %v2507_v24 }
 0x5b1   : >> { %v1067_v14 = vpop.f32.mrb[20].mxu1 }
 0x5b2   : >> { %v1068_v15 = vadd.f32 %v2394_v29, %v1067_v14  ;;  %v1848_v16 = vpop.f32.mrb[21].mxu1 }
 0x5b3   : >> { %v1070_v17 = vpop.f32.mrb[22].mxu1 }
 0x5b4   : >> { %2086 = vtanh.f32 %v1068_v15  ;;  %v1849_v18 = vpop.f32.mrb[23].mxu1 }
 0x5b6   : >> { %v2083_v19 = vpop.eup %2082 }
 0x5b7   : >> { %2088 = vtanh.f32 %v2083_v19  ;;  %1127 = vrot.lane.b32.xlu1 %v2083_v19, %s2191_s27  ;;  %v2085_v20 = vpop.eup %2084 }
 0x5b8   : >> { %v767_v22 = vadd.f32 %v2166_v5, %v2085_v20  ;;  %v1182_v5 = vpack.c.bf16 %v2536_v55, %v2536_v55 }
 0x5be   : >> { %v2087_v21 = vpop.eup %2086 }
 0x5bf   : >> { %2090 = vtanh.f32 %v2087_v21  ;;  %1230 = vrot.lane.b32.xlu0 %v2087_v21, %s2191_s27 }
 0x5c1   : >> { %v2089_v23 = vpop.eup %2088 }
 0x5c2   : >> { %v2573_v30 = vadd.f32 %v2089_v23, %v767_v22 }
 0x5c9   : >> { %v2091_v31 = vpop.eup %2090 }
 0x5ca   : >> { %v1079_v24 = vsel %vm432_vm3, %v2091_v31, %v1077_v32 }
 0x5cb   : >> { %v1080_v33 = vpack.c.bf16 %v1079_v24, %v1079_v24 }
 0x5cd   : >> { %1859 = vmatmul.mubr.msk.bf16.vlgmr.msra.gmra.mrb[16].mxu0 %vm524_vm4, %v1080_v33 }
 0x5ce   : >> { %1879 = vmatpush3.bf16.msra.mxu0 %v2304_v6  ;;  %1882 = vmatprep.mubr.msk.bf16.mxu0 %vm2190_vm2, %v2189_v7 }
 0x5cf   : >> { %1880 = vmatprep.subr.bf16.mxu0 %v2189_v7 }
 0x5d2   : >> { %1881 = vmatpush3.bf16.msra.mxu0 %v2312_v8 }
 0x5d3   : >> { %1886 = vmatprep.subr.bf16.mxu0 %v2189_v7 }
 0x5d5   : >> { %1883 = vmatmul.mubr.msk.bf16.vlgmr.msra.gmra.mrb[20].mxu0 %vm432_vm3, %v1182_v5 }
 0x5d6   : >> { %1887 = vmatpush3.bf16.msra.mxu0 %v2328_v10  ;;  %1894 = vmatprep.mubr.msk.bf16.mxu0 %vm2190_vm2, %v2189_v7 }
 0x5d7   : >> { %1888 = vmatprep.subr.bf16.mxu0 %v2189_v7 }
 0x5da   : >> { %1889 = vmatpush3.bf16.msra.mxu0 %v2335_v11 }
 0x5db   : >> { %1890 = vmatprep.subr.bf16.mxu0 %v2189_v7 }
 0x5de   : >> { %1891 = vmatpush3.bf16.msra.mxu0 %v2341_v12 }
 0x5df   : >> { %1892 = vmatprep.subr.bf16.mxu0 %v2189_v7 }
 0x5e2   : >> { %1893 = vmatpush3.bf16.msra.mxu0 %v2349_v13 }
 0x5e3   : >> { %1910 = vmatprep.subr.bf16.mxu0 %v2189_v7 }
 0x629   : >> { %v1128_v49 = vpop.permute.xlu1 %1127 }
 0x631   : >> { %v1231_v53 = vpop.permute.xlu0 %1230 }
 0x6a0   : >> { %v1118_v6 = vpop.f32.mrb[16].mxu0 }
 0x6a1   : >> { %v1119_v8 = vadd.f32 %v2464_v47, %v1118_v6  ;;  %v1860_v10 = vpop.f32.mrb[17].mxu0 }
 0x6a2   : >> { %v1121_v34 = vpop.f32.mrb[18].mxu0 }
 0x6a3   : >> { %2092 = vtanh.f32 %v1119_v8  ;;  %v1861_v35 = vpop.f32.mrb[19].mxu0 }
 0x6a8   : >> { %v1220_v37 = vpop.f32.mrb[20].mxu0 }
 0x6a9   : >> { %v1226_v11 = vadd.f32 %v1630_v36, %v1220_v37  ;;  %v1884_v38 = vpop.f32.mrb[21].mxu0 }
 0x6aa   : >> { %v1223_v39 = vpop.f32.mrb[22].mxu0 }
 0x6ab   : >> { %2094 = vtanh.f32 %v1226_v11  ;;  %v1885_v12 = vpop.f32.mrb[23].mxu0 }
 0x6ad   : >> { %v2093_v40 = vpop.eup %2092 }
 0x6ae   : >> { %2096 = vtanh.f32 %v2093_v40  ;;  %1281 = vrot.lane.b32.xlu0 %v2093_v40, %s2191_s27 }
 0x6b5   : >> { %v2599_v1 = vpop.eup %2094  }
 0x6b6   : >> { %v2710_v13 = vmov %v2599_v1 }
 0x6b7   : >> { %2098 = vtanh.f32 %v2710_v13  ;;  %1384 = vst.msk [vmem:[#allocation2] sm:$0xff] (%p402_p6), %vm432_vm3, %v2710_v13 }
 0x6b8   : >> { %v2097_v48 = vpop.eup %2096 }
 0x6b9   : >> { %v1130_v50 = vsel %vm432_vm3, %v2097_v48, %v1128_v49 }
 0x6ba   : >> { %v1131_v51 = vpack.c.bf16 %v1130_v50, %v1130_v50 }
 0x6bc   : >> { %1875 = vmatmul.mubr.msk.bf16.vlgmr.msra.gmra.mrb[24].mxu1 %vm721_vm5, %v1131_v51 }
 0x6bd   : >> { %1899 = vmatpush3.bf16.msra.mxu1 %v2366_v25  ;;  %1906 = vmatprep.mubr.msk.bf16.mxu1 %vm2190_vm2, %v2189_v7 }
 0x6be   : >> { %1900 = vmatprep.subr.bf16.mxu1 %v2189_v7 }
 0x6c1   : >> { %v2099_v52 = vpop.eup %2098  ;;  %1901 = vmatpush3.bf16.msra.mxu1 %v2373_v26 }
 0x6c2   : >> { %v1233_v54 = vsel %vm432_vm3, %v2099_v52, %v1231_v53  ;;  %1902 = vmatprep.subr.bf16.mxu1 %v2189_v7 }
 0x6c3   : >> { %v1234_v55 = vpack.c.bf16 %v1233_v54, %v1233_v54 }
 0x6c5   : >> { %1895 = vmatmul.mubr.msk.bf16.vlgmr.msra.gmra.mrb[24].mxu0 %vm524_vm4, %v1234_v55  ;;  %1903 = vmatpush3.bf16.msra.mxu1 %v2379_v27 }
 0x6c6   : >> { %1911 = vmatpush3.bf16.msra.mxu0 %v2422_v41  ;;  %1904 = vmatprep.subr.bf16.mxu1 %v2189_v7 }
 0x6c7   : >> { %1912 = vmatprep.subr.bf16.mxu0 %v2189_v7  ;;  %1922 = vmatprep.mubr.msk.bf16.mxu0 %vm2190_vm2, %v2189_v7 }
 0x6c9   : >> { %1905 = vmatpush3.bf16.msra.mxu1 %v2386_v28 }
 0x6ca   : >> { %1913 = vmatpush3.bf16.msra.mxu0 %v2429_v42 }
 0x6cb   : >> { %1914 = vmatprep.subr.bf16.mxu0 %v2189_v7 }
 0x6ce   : >> { %1915 = vmatpush3.bf16.msra.mxu0 %v2436_v43 }
 0x6cf   : >> { %1916 = vmatprep.subr.bf16.mxu0 %v2189_v7 }
 0x6d2   : >> { %1917 = vmatpush3.bf16.msra.mxu0 %v2443_v44 }
 0x6d3   : >> { %1918 = vmatprep.subr.bf16.mxu0 %v2189_v7 }
 0x6d6   : >> { %1919 = vmatpush3.bf16.msra.mxu0 %v2450_v45 }
 0x6d7   : >> { %1920 = vmatprep.subr.bf16.mxu0 %v2189_v7 }
 0x6da   : >> { %1921 = vmatpush3.bf16.msra.mxu0 %v2457_v46 }
 0x720   : >> { %v1282_v60 = vpop.permute.xlu0 %1281 }
 0x78f   : >> { %v1169_v25 = vpop.f32.mrb[24].mxu1 }
 0x790   : >> { %v1170_v26 = vadd.f32 %v2503_v9, %v1169_v25  ;;  %v1876_v27 = vpop.f32.mrb[25].mxu1 }
 0x791   : >> { %v1172_v28 = vpop.f32.mrb[26].mxu1 }
 0x792   : >> { %2100 = vtanh.f32 %v1170_v26  ;;  %v1877_v41 = vpop.f32.mrb[27].mxu1 }
 0x798   : >> { %v1272_v42 = vpop.f32.mrb[24].mxu0 }
 0x799   : >> { %v1273_v43 = vadd.f32 %v2394_v29, %v1272_v42  ;;  %v1896_v56 = vpop.f32.mrb[25].mxu0 }
 0x79a   : >> { %v1275_v44 = vpop.f32.mrb[26].mxu0 }
 0x79b   : >> { %2102 = vtanh.f32 %v1273_v43  ;;  %v1897_v57 = vpop.f32.mrb[27].mxu0 }
 0x79c   : >> { %v2101_v58 = vpop.eup %2100 }
 0x79d   : >> { %2104 = vtanh.f32 %v2101_v58  ;;  %1332 = vrot.lane.b32.xlu1 %v2101_v58, %s2191_s27 }
 0x7a5   : >> { %v2103_v7 = vpop.eup %2102  }
 0x7a6   : >> { %2106 = vtanh.f32 %v2103_v7  ;;  %1385 = vst.msk [vmem:[#allocation3] sm:$0xff] (%p402_p6), %vm432_vm3, %v2103_v7 }
 0x7a7   : >> { %v2105_v45 = vpop.eup %2104 }
 0x7a8   : >> { %v1177_v46 = vadd.f32 %v2105_v45, %v2573_v30 }
 0x7b0   : >> { %v2107_v59 = vpop.eup %2106 }
 0x7b1   : >> { %v1284_v61 = vsel %vm432_vm3, %v2107_v59, %v1282_v60 }
 0x7b2   : >> { %v1285_v62 = vpack.c.bf16 %v1284_v61, %v1284_v61 }
 0x7b4   : >> { %1907 = vmatmul.mubr.msk.bf16.vlgmr.msra.gmra.mrb[28].mxu1 %vm524_vm4, %v1285_v62 }
 0x80f   : >> { %v1333_v4 = vpop.permute.xlu1 %1332 }
 0x887   : >> { %v1323_v29 = vpop.f32.mrb[28].mxu1 }
 0x888   : >> { %v1324_v63 = vadd.f32 %v2464_v47, %v1323_v29  ;;  %v1908_v0 = vpop.f32.mrb[29].mxu1 }
 0x889   : >> { %v1326_v1 = vpop.f32.mrb[30].mxu1 }
 0x88a   : >> { %2108 = vtanh.f32 %v1324_v63  ;;  %v1909_v2 = vpop.f32.mrb[31].mxu1  ;;  %v2715_v1 = vmov %v2710_v13 }
 0x88b   : >> { %v2714_v2 = vmov %v2103_v7 }
 0x894   : >> { %v2109_v14 = vpop.eup %2108  }
 0x895   : >> { %2110 = vtanh.f32 %v2109_v14  ;;  %1386 = vst.msk [vmem:[#allocation4] sm:$0xff] (%p402_p6), %vm432_vm3, %v2109_v14 }
 0x89f   : >> { %v2111_v3 = vpop.eup %2110 }
 0x8a0   : >> { %v1335_v15 = vsel %vm432_vm3, %v2111_v3, %v1333_v4  ;;  %v2713_v3 = vmov %v2109_v14 }
 0x8a1   : >> { %v1336_v16 = vpack.c.bf16 %v1335_v15, %v1335_v15 }
 0x8a3   : >> { %1923 = vmatmul.mubr.msk.bf16.vlgmr.msra.gmra.mrb[28].mxu0 %vm721_vm5, %v1336_v16 }
 0x976   : >> { %v1374_v17 = vpop.f32.mrb[28].mxu0 }
 0x977   : >> { %v1375_v18 = vadd.f32 %v2503_v9, %v1374_v17  ;;  %v1924_v19 = vpop.f32.mrb[29].mxu0 }
 0x978   : >> { %v1377_v20 = vpop.f32.mrb[30].mxu0 }
 0x979   : >> { %2112 = vtanh.f32 %v1375_v18  ;;  %v1925_v47 = vpop.f32.mrb[31].mxu0 }
 0x983   : >> { %v2113_v21 = vpop.eup %2112  }
 0x984   : >> { %2114 = vtanh.f32 %v2113_v21  ;;  %v2712_v4 = vmov %v2113_v21  ;;  %1388 = vst.msk [vmem:[#allocation5] sm:$0xff] (%p402_p6), %vm524_vm4, %v2113_v21 }
 0x98b   : > { %404 = sbr.rel (!%p402_p6) target bundleno = 26 (0x1a), region = 109 }
 0x98e   : >> { %v2115_v22 = vpop.eup %2114 }
 0x98f   : >> { %v1382_v23 = vadd.f32 %v2115_v22, %v1177_v46  }
 0x991   : >> { %v2711_v5 = vmov %v1382_v23  ;;  %1389 = vst.msk [vmem:[#allocation6] sm:$0xff] (%p402_p6), %vm524_vm4, %v1382_v23 }
 0x992   : > { %1393 = sbr.rel (%p1635_p7) target bundleno = 2683 (0xa7b), region = 75  ;;  %v1396_v9 = vld [vmem:[%s2707_s8] sm:$0xff] (!%p1635_p7)  ;;  %v1397_v30 = vld [vmem:[%s2707_s8 + $0x8] sm:$0xff] (!%p1635_p7)  ;;  %v1398_v31 = vld [vmem:[%s2707_s8 + $0x10] sm:$0xff] (!%p1635_p7)  ;;  %v2192_v32 = vmov (!%p1635_p7), 0.0|0.0   ;;  %vm2193_vm6 = vmmov (!%p1635_p7), 0  }
 0x993   : > { %1945 = vmatprep.subr.bf16.mxu0 (!%p1635_p7), %v2192_v32  ;;  %v1946_v24 = vpack.c.bf16 (!%p1635_p7), %v1397_v30, %v1396_v9  ;;  %v1399_v33 = vld [vmem:[%s2707_s8 + $0x18] sm:$0xff] (!%p1635_p7)  ;;  %v2194_v5 = vmov (!%p1635_p7), 0.0   ;;  %v1400_v8 = vld [vmem:[%s2707_s8 + $0x20] sm:$0xff] (!%p1635_p7)  ;;  %v1401_v10 = vld [vmem:[%s2707_s8 + $0x28] sm:$0xff] (!%p1635_p7)  ;;  %vm1484_vm7 = vcmask (!%p1635_p7), 15360  }
 0x994   : > { %1942 = vmatprep.mubr.msk.f32.mxu0 (!%p1635_p7), %vm2193_vm6, %v2194_v5  ;;  %v1949_v6 = vpack.c.bf16 (!%p1635_p7), %v1399_v33, %v1398_v31  ;;  %v1952_v34 = vpack.c.bf16 (!%p1635_p7), %v1401_v10, %v1400_v8  ;;  %v1402_v35 = vld [vmem:[%s2707_s8 + $0x30] sm:$0xff] (!%p1635_p7)  ;;  %v1403_v36 = vld [vmem:[%s2707_s8 + $0x38] sm:$0xff] (!%p1635_p7)  ;;  %v1636_v39 = vld [vmem:[%s2708_s9] ss:$0 sm:$0xff] (!%p1635_p7) }
 0x995   : > { %1947 = vmatpush3.bf16.msra.mxu0 (!%p1635_p7), %v1946_v24  ;;  %v1955_v37 = vpack.c.bf16 (!%p1635_p7), %v1403_v36, %v1402_v35 }
 0x996   : > { %1948 = vmatprep.subr.bf16.mxu0 (!%p1635_p7), %v2192_v32 }
 0x998   : > { %v1394_v11 = vld [vmem:[#allocation6] sm:$0xff] (!%p1635_p7) }
 0x999   : > { %1950 = vmatpush3.bf16.msra.mxu0 %v1949_v6  ;;  %v1395_v38 = vmul.f32 0.00390625, %v1394_v11 }
 0x99a   : > { %1951 = vmatprep.subr.bf16.mxu0 %v2192_v32 }
 0x99d   : > { %1953 = vmatpush3.bf16.msra.mxu0 %v1952_v34 }
 0x99e   : > { %1954 = vmatprep.subr.bf16.mxu0 %v2192_v32 }
 0x9a1   : > { %1956 = vmatpush3.bf16.msra.mxu0 %v1955_v37 }
 0x9a4   : > { %1943 = vmatmul.mubr.msk.f32.vlgmr.msra.gmra.mrb[0].mxu0 %vm524_vm4, %v1395_v38 }
 0xa77   : > { %v1480_v12 = vpop.f32.mrb[0].mxu0 }
 0xa78   : > { %v1481_v40 = vadd.f32 %v1636_v39, %v1480_v12  ;;  %v1944_v13 = vpop.f32.mrb[1].mxu0 }
 0xa7a   : > { %1485 = vst.msk [vmem:[%s2709_s10] sm:$0xff] %vm1484_vm7, %v1481_v40 }
 0xa7b PF: > { %s20_s15 = sadd.s32 1, %s2162_s15   ;;  %s2716_s13 = smov %s2158_s14 }
 0xa7c   : > { %p17_p8 = scmp.ge.s32.totalorder %s20_s15, 4   ;;  %s2717_s14 = smov %s2719_s16 }
 0xa7e   :  { %19 = sbr.rel (!%p17_p8) target bundleno = 2 (0x2), region = 120 }

</bundles_post_ra>
